<compile_context>
chip_gen: v7x
topology: tpu7x:2x2x1
jax: 0.10.0
libtpu: 0.0.40
codegen_flags: <defaults>
</compile_context>

<pallas_src>
import jax
import jax.numpy as jnp
from jax.experimental import pallas as pl
from jax.experimental.pallas import tpu as pltpu


# ----------------------------------------------------------------------------
# Fused kernel: encoder head + LSTM + rnn_fc + final_layer in one invocation.
# ----------------------------------------------------------------------------
def fused_kernel(pooled_ref, seq_ref,
                 we_ref, be_ref, wh_ref, bh_ref,
                 wih_ref, whh_ref, bl_ref,
                 wfc_ref, bfc_ref,
                 w1_ref, w2_ref, bf_ref,
                 o_ref,
                 h_sc, c_sc, xw_sc, hid_sc):
    f32 = jnp.float32

    # ---- encoder: (B, PD) -> (B, E) -> (B, OUT_PAD) -------------------------
    # (mean over patches already applied in the glue; mean(XW+b) == mean(X)W+b)
    emb = jnp.dot(pooled_ref[...], we_ref[...], preferred_element_type=f32) + be_ref[...]
    enc = jnp.dot(emb, wh_ref[...], preferred_element_type=f32) + bh_ref[...]

    # ---- LSTM (PyTorch gate order i, f, g, o) -------------------------------
    T, N, I = seq_ref.shape
    H = whh_ref.shape[0]

    # Hoist the input projection (and bias) out of the recurrence: one matmul.
    x_all = seq_ref[...].reshape(T * N, I)
    xw = jnp.dot(x_all, wih_ref[...], preferred_element_type=f32) + bl_ref[...]
    xw_sc[...] = xw.reshape(T, N, 4 * H)

    h_sc[...] = jnp.zeros_like(h_sc)
    c_sc[...] = jnp.zeros_like(c_sc)

    def step(t, carry):
        gates = xw_sc[t] + jnp.dot(h_sc[...], whh_ref[...],
                                   preferred_element_type=f32)      # (N, 4H)
        # H=32 < 128 lanes -> sub-lane-width slices; acceptable at this size.
        i = jax.nn.sigmoid(gates[:, 0 * H:1 * H])
        f = jax.nn.sigmoid(gates[:, 1 * H:2 * H])
        g = jnp.tanh(gates[:, 2 * H:3 * H])
        o = jax.nn.sigmoid(gates[:, 3 * H:4 * H])
        c = f * c_sc[...] + i * g
        h = o * jnp.tanh(c)
        c_sc[...] = c
        h_sc[...] = h
        hid_sc[t] = h
        return carry

    jax.lax.fori_loop(0, T, step, 0, unroll=True)

    # ---- decoder head: rnn_fc + concat-split final layer --------------------
    hid_flat = hid_sc[...].reshape(T, N * H)
    rnn_fc = jnp.dot(hid_flat, wfc_ref[...], preferred_element_type=f32) + bfc_ref[...]
    out = (jnp.dot(enc, w1_ref[...], preferred_element_type=f32)
           + jnp.dot(rnn_fc, w2_ref[...], preferred_element_type=f32)
           + bf_ref[...])
    o_ref[...] = out                                                 # (B, C_PAD)


def fused_forward(pooled, seq, kp):
    B, _ = pooled.shape
    T, N, _ = seq.shape
    assert B == T, "concat along dim=1 requires image batch == LSTM seq length"
    H = kp["w_hh_t"].shape[0]
    C_PAD = kp["w_fin1_t_pad"].shape[1]
    vmem = pl.BlockSpec(memory_space=pltpu.MemorySpace.VMEM)
    return pl.pallas_call(
        fused_kernel,
        out_shape=jax.ShapeDtypeStruct((B, C_PAD), jnp.float32),
        in_specs=[vmem] * 14,
        out_specs=vmem,
        scratch_shapes=[
            pltpu.VMEM((N, H), jnp.float32),            # h state
            pltpu.VMEM((N, H), jnp.float32),            # c state
            pltpu.VMEM((T, N, 4 * H), jnp.float32),     # hoisted x @ W_ih + b
            pltpu.VMEM((T, N, H), jnp.float32),         # collected hidden states
        ],
    )(pooled, seq,
      kp["w_embed"], kp["b_embed"], kp["w_head_pad"], kp["b_head_pad"],
      kp["w_ih_t"], kp["w_hh_t"], kp["b_lstm"],
      kp["w_fc_t_pad"], kp["b_fc_pad"],
      kp["w_fin1_t_pad"], kp["w_fin2_t_pad"], kp["b_fin_pad"])


# ----------------------------------------------------------------------------
# Glue (plain JAX): NCHW image -> patch matrix -> mean pool; slice off padding.
# ----------------------------------------------------------------------------
def img_to_patches(img, patch=4):
    # img: (B, 3, H, W) NCHW -> (B, P, 3*patch*patch), channel-major per patch.
    B, C, H, W = img.shape
    x = img.reshape(B, C, H // patch, patch, W // patch, patch)
    x = jnp.transpose(x, (0, 2, 4, 1, 3, 5))            # (B, Hp, Wp, C, p, p)
    return x.reshape(B, (H // patch) * (W // patch), C * patch * patch)


def swin_tr_pth2rnn_forward(params, kparams, img, seq):
    patches = img_to_patches(img)                        # (B, P, PD)
    pooled = jnp.mean(patches, axis=1)                   # (B, PD) pool-first
    class_n = params["b_fin"].shape[1]
    out_pad = fused_forward(pooled, seq, kparams)        # (B, C_PAD)
    return out_pad[:, :class_n]                          # (B, class_n)


# ----------------------------------------------------------------------------
# Pure-JAX reference (unpadded params) for correctness check
# ----------------------------------------------------------------------------
def reference_forward(params, img, seq):
    patches = img_to_patches(img)
    emb = patches @ params["w_embed"] + params["b_embed"]
    enc_out = jnp.mean(emb, axis=1) @ params["w_head"] + params["b_head"]

    T, N, _ = seq.shape
    H = params["w_hh_t"].shape[0]

    def step(carry, x_t):
        h, c = carry
        gates = x_t @ params["w_ih_t"] + h @ params["w_hh_t"] + params["b_lstm"]
        i = jax.nn.sigmoid(gates[:, :H])
        f = jax.nn.sigmoid(gates[:, H:2 * H])
        g = jnp.tanh(gates[:, 2 * H:3 * H])
        o = jax.nn.sigmoid(gates[:, 3 * H:4 * H])
        c = f * c + i * g
        h = o * jnp.tanh(c)
        return (h, c), h

    init = (jnp.zeros((N, H), jnp.float32), jnp.zeros((N, H), jnp.float32))
    _, hs = jax.lax.scan(step, init, seq)
    hid_flat = hs.reshape(T, -1)
    rnn_fc = hid_flat @ params["w_fc_t"] + params["b_fc"]
    out = enc_out @ params["w_fin1_t"] + rnn_fc @ params["w_fin2_t"] + params["b_fin"]
    return out


# ----------------------------------------------------------------------------
# Parameter init (logical shapes follow the PyTorch module) + kernel-side
# zero-padded copies (1000 -> 1024 features, class_n -> 128 lanes).
# ----------------------------------------------------------------------------
def init_params(key, *, max_len, num_features, class_n, embedding_dim,
                enc_embed_dim, patch_dim, enc_out_features=1000):
    ks = jax.random.split(key, 12)
    s = 0.05
    H = embedding_dim

    # Encoder (simplified stand-in): patch embed + head Linear(enc_embed_dim, 1000)
    w_embed = s * jax.random.normal(ks[0], (patch_dim, enc_embed_dim), jnp.float32)
    b_embed = s * jax.random.normal(ks[1], (1, enc_embed_dim), jnp.float32)
    w_head = s * jax.random.normal(ks[2], (enc_embed_dim, enc_out_features), jnp.float32)
    b_head = s * jax.random.normal(ks[3], (1, enc_out_features), jnp.float32)

    # nn.LSTM(max_len, embedding_dim): weight_ih (4H, max_len), weight_hh (4H, H)
    w_ih = s * jax.random.normal(ks[4], (4 * H, max_len), jnp.float32)
    w_hh = s * jax.random.normal(ks[5], (4 * H, H), jnp.float32)
    b_ih = s * jax.random.normal(ks[6], (4 * H,), jnp.float32)
    b_hh = s * jax.random.normal(ks[7], (4 * H,), jnp.float32)

    # rnn_fc: Linear(num_features * embedding_dim, 1000)
    w_fc = s * jax.random.normal(ks[8], (1000, num_features * H), jnp.float32)
    b_fc = s * jax.random.normal(ks[9], (1, 1000), jnp.float32)

    # final_layer: Linear(1000 + 1000, class_n) -> split over the concat
    w_fin = s * jax.random.normal(ks[10], (class_n, 2000), jnp.float32)
    b_fin = s * jax.random.normal(ks[11], (1, class_n), jnp.float32)

    return {
        "w_embed": w_embed, "b_embed": b_embed,
        "w_head": w_head, "b_head": b_head,
        "w_ih_t": w_ih.T, "w_hh_t": w_hh.T,
        "b_lstm": (b_ih + b_hh)[None, :],
        "w_fc_t": w_fc.T, "b_fc": b_fc,
        "w_fin1_t": w_fin[:, :1000].T,      # acts on enc_out
        "w_fin2_t": w_fin[:, 1000:].T,      # acts on rnn_fc output
        "b_fin": b_fin,
    }


def _round_up(n, m):
    return ((n + m - 1) // m) * m


def prepare_kernel_params(params):
    out_dim = params["w_head"].shape[1]
    class_n = params["b_fin"].shape[1]
    out_pad = _round_up(out_dim, 128)       # 1000 -> 1024
    c_pad = _round_up(class_n, 128)         # 16   -> 128

    def padc(a, tgt):
        return jnp.pad(a, ((0, 0), (0, tgt - a.shape[1])))

    def padr(a, tgt):
        return jnp.pad(a, ((0, tgt - a.shape[0]), (0, 0)))

    return {
        "w_embed": params["w_embed"],
        "b_embed": params["b_embed"],
        "w_head_pad": padc(params["w_head"], out_pad),
        "b_head_pad": padc(params["b_head"], out_pad),
        "w_ih_t": params["w_ih_t"],
        "w_hh_t": params["w_hh_t"],
        "b_lstm": params["b_lstm"],
        "w_fc_t_pad": padc(params["w_fc_t"], out_pad),
        "b_fc_pad": padc(params["b_fc"], out_pad),
        "w_fin1_t_pad": padc(padr(params["w_fin1_t"], out_pad), c_pad),
        "w_fin2_t_pad": padc(padr(params["w_fin2_t"], out_pad), c_pad),
        "b_fin_pad": padc(params["b_fin"], c_pad),
    }


if __name__ == "__main__":
    key = jax.random.PRNGKey(0)
    k_img, k_seq, k_par = jax.random.split(key, 3)

    # Small shapes consistent with the forward:
    B = 2                 # images == LSTM time steps (shared dim for the concat)
    max_len = 16          # LSTM input_size
    num_features = 8      # LSTM "batch" axis
    embedding_dim = 32    # LSTM hidden size
    class_n = 16
    enc_embed_dim = 64
    patch = 4
    img_hw = 16
    patch_dim = 3 * patch * patch

    img = jax.random.normal(k_img, (B, 3, img_hw, img_hw), jnp.float32)   # NCHW
    seq = jax.random.normal(k_seq, (B, num_features, max_len), jnp.float32)

    params = init_params(k_par, max_len=max_len, num_features=num_features,
                         class_n=class_n, embedding_dim=embedding_dim,
                         enc_embed_dim=enc_embed_dim, patch_dim=patch_dim)
    kparams = prepare_kernel_params(params)

    out = swin_tr_pth2rnn_forward(params, kparams, img, seq)
    out = jax.block_until_ready(out)

    ref = reference_forward(params, img, seq)
    assert out.shape == (B, class_n), out.shape
    assert jnp.allclose(out, ref, atol=5e-4, rtol=5e-4), (
        float(jnp.max(jnp.abs(out - ref))))

    print("KERNEL_OK")
</pallas_src>

<mosaic_0001>
module attributes {stable_mosaic.version = 11 : i64} {
  func.func @fused_kernel(%arg0: memref<2x48xf32, #tpu.memory_space<vmem>>, %arg1: memref<2x8x16xf32, #tpu.memory_space<vmem>>, %arg2: memref<48x64xf32, #tpu.memory_space<vmem>>, %arg3: memref<1x64xf32, #tpu.memory_space<vmem>>, %arg4: memref<64x1024xf32, #tpu.memory_space<vmem>>, %arg5: memref<1x1024xf32, #tpu.memory_space<vmem>>, %arg6: memref<16x128xf32, #tpu.memory_space<vmem>>, %arg7: memref<32x128xf32, #tpu.memory_space<vmem>>, %arg8: memref<1x128xf32, #tpu.memory_space<vmem>>, %arg9: memref<256x1024xf32, #tpu.memory_space<vmem>>, %arg10: memref<1x1024xf32, #tpu.memory_space<vmem>>, %arg11: memref<1024x128xf32, #tpu.memory_space<vmem>>, %arg12: memref<1024x128xf32, #tpu.memory_space<vmem>>, %arg13: memref<1x128xf32, #tpu.memory_space<vmem>>, %arg14: memref<2x128xf32, #tpu.memory_space<vmem>>, %arg15: memref<8x32xf32, #tpu.memory_space<vmem>>, %arg16: memref<8x32xf32, #tpu.memory_space<vmem>>, %arg17: memref<2x8x128xf32, #tpu.memory_space<vmem>>, %arg18: memref<2x8x32xf32, #tpu.memory_space<vmem>>) attributes {dimension_semantics = [], scalar_prefetch = 0 : i64, scratch_operands = 4 : i64, tpu.core_type = #tpu.core_type<tc>} {
    %c0 = arith.constant 0 : index
    %c0_0 = arith.constant 0 : index
    %0 = vector.load %arg0[%c0, %c0_0] : memref<2x48xf32, #tpu.memory_space<vmem>>, vector<2x48xf32>
    %c0_1 = arith.constant 0 : index
    %c0_2 = arith.constant 0 : index
    %1 = vector.load %arg2[%c0_1, %c0_2] : memref<48x64xf32, #tpu.memory_space<vmem>>, vector<48x64xf32>
    %cst = arith.constant dense<0.000000e+00> : vector<2x64xf32>
    %2 = tpu.matmul %0, %1, %cst {dimension_numbers = #tpu.dot_dimension_numbers<[1], [0], [0], [1], [0, 0, 1, 1], [], []>} : vector<2x48xf32>, vector<48x64xf32>, vector<2x64xf32> -> vector<2x64xf32>
    %c0_3 = arith.constant 0 : index
    %c0_4 = arith.constant 0 : index
    %3 = vector.load %arg3[%c0_3, %c0_4] : memref<1x64xf32, #tpu.memory_space<vmem>>, vector<1x64xf32>
    %4 = vector.broadcast %3 : vector<1x64xf32> to vector<2x64xf32>
    %5 = arith.addf %2, %4 : vector<2x64xf32>
    %c0_5 = arith.constant 0 : index
    %c0_6 = arith.constant 0 : index
    %6 = vector.load %arg4[%c0_5, %c0_6] : memref<64x1024xf32, #tpu.memory_space<vmem>>, vector<64x1024xf32>
    %cst_7 = arith.constant dense<0.000000e+00> : vector<2x1024xf32>
    %7 = tpu.matmul %5, %6, %cst_7 {dimension_numbers = #tpu.dot_dimension_numbers<[1], [0], [0], [1], [0, 0, 1, 1], [], []>} : vector<2x64xf32>, vector<64x1024xf32>, vector<2x1024xf32> -> vector<2x1024xf32>
    %c0_8 = arith.constant 0 : index
    %c0_9 = arith.constant 0 : index
    %8 = vector.load %arg5[%c0_8, %c0_9] : memref<1x1024xf32, #tpu.memory_space<vmem>>, vector<1x1024xf32>
    %9 = vector.broadcast %8 : vector<1x1024xf32> to vector<2x1024xf32>
    %10 = arith.addf %7, %9 : vector<2x1024xf32>
    %c0_10 = arith.constant 0 : index
    %c0_11 = arith.constant 0 : index
    %c0_12 = arith.constant 0 : index
    %11 = vector.load %arg1[%c0_10, %c0_11, %c0_12] : memref<2x8x16xf32, #tpu.memory_space<vmem>>, vector<2x8x16xf32>
    %12 = vector.shape_cast %11 : vector<2x8x16xf32> to vector<16x16xf32>
    %c0_13 = arith.constant 0 : index
    %c0_14 = arith.constant 0 : index
    %13 = vector.load %arg6[%c0_13, %c0_14] : memref<16x128xf32, #tpu.memory_space<vmem>>, vector<16x128xf32>
    %cst_15 = arith.constant dense<0.000000e+00> : vector<16x128xf32>
    %14 = tpu.matmul %12, %13, %cst_15 {dimension_numbers = #tpu.dot_dimension_numbers<[1], [0], [0], [1], [0, 0, 1, 1], [], []>} : vector<16x16xf32>, vector<16x128xf32>, vector<16x128xf32> -> vector<16x128xf32>
    %c0_16 = arith.constant 0 : index
    %c0_17 = arith.constant 0 : index
    %15 = vector.load %arg8[%c0_16, %c0_17] : memref<1x128xf32, #tpu.memory_space<vmem>>, vector<1x128xf32>
    %16 = vector.broadcast %15 : vector<1x128xf32> to vector<16x128xf32>
    %17 = arith.addf %14, %16 : vector<16x128xf32>
    %18 = vector.shape_cast %17 : vector<16x128xf32> to vector<2x8x128xf32>
    %c0_18 = arith.constant 0 : index
    %c0_19 = arith.constant 0 : index
    %c0_20 = arith.constant 0 : index
    %19 = vector.load %arg17[%c0_18, %c0_19, %c0_20] : memref<2x8x128xf32, #tpu.memory_space<vmem>>, vector<2x8x128xf32>
    tpu.vector_store %arg17[%c0_18, %c0_19, %c0_20], %18 {strides = array<i32>} : memref<2x8x128xf32, #tpu.memory_space<vmem>>, vector<2x8x128xf32>,
    %cst_21 = arith.constant 0.000000e+00 : f32
    %20 = vector.broadcast %cst_21 : f32 to vector<8x32xf32>
    %c0_22 = arith.constant 0 : index
    %c0_23 = arith.constant 0 : index
    %21 = vector.load %arg15[%c0_22, %c0_23] : memref<8x32xf32, #tpu.memory_space<vmem>>, vector<8x32xf32>
    tpu.vector_store %arg15[%c0_22, %c0_23], %20 {strides = array<i32>} : memref<8x32xf32, #tpu.memory_space<vmem>>, vector<8x32xf32>,
    %cst_24 = arith.constant 0.000000e+00 : f32
    %22 = vector.broadcast %cst_24 : f32 to vector<8x32xf32>
    %c0_25 = arith.constant 0 : index
    %c0_26 = arith.constant 0 : index
    %23 = vector.load %arg16[%c0_25, %c0_26] : memref<8x32xf32, #tpu.memory_space<vmem>>, vector<8x32xf32>
    tpu.vector_store %arg16[%c0_25, %c0_26], %22 {strides = array<i32>} : memref<8x32xf32, #tpu.memory_space<vmem>>, vector<8x32xf32>,
    %c0_i32 = arith.constant 0 : i32
    %24 = arith.index_cast %c0_i32 : i32 to index
    %c0_27 = arith.constant 0 : index
    %c0_28 = arith.constant 0 : index
    %25 = vector.load %arg17[%24, %c0_27, %c0_28] : memref<2x8x128xf32, #tpu.memory_space<vmem>>, vector<1x8x128xf32>
    %26 = vector.shape_cast %25 : vector<1x8x128xf32> to vector<8x128xf32>
    %c0_29 = arith.constant 0 : index
    %c0_30 = arith.constant 0 : index
    %27 = vector.load %arg15[%c0_29, %c0_30] : memref<8x32xf32, #tpu.memory_space<vmem>>, vector<8x32xf32>
    %c0_31 = arith.constant 0 : index
    %c0_32 = arith.constant 0 : index
    %28 = vector.load %arg7[%c0_31, %c0_32] : memref<32x128xf32, #tpu.memory_space<vmem>>, vector<32x128xf32>
    %cst_33 = arith.constant dense<0.000000e+00> : vector<8x128xf32>
    %29 = tpu.matmul %27, %28, %cst_33 {dimension_numbers = #tpu.dot_dimension_numbers<[1], [0], [0], [1], [0, 0, 1, 1], [], []>} : vector<8x32xf32>, vector<32x128xf32>, vector<8x128xf32> -> vector<8x128xf32>
    %30 = arith.addf %26, %29 : vector<8x128xf32>
    %31 = vector.extract_strided_slice %30 {offsets = [0, 0], sizes = [8, 32], strides = [1, 1]} : vector<8x128xf32> to vector<8x32xf32>
    %32 = arith.negf %31 : vector<8x32xf32>
    %33 = math.exp %32 : vector<8x32xf32>
    %cst_34 = arith.constant 1.000000e+00 : f32
    %34 = vector.broadcast %cst_34 : f32 to vector<8x32xf32>
    %35 = arith.addf %34, %33 : vector<8x32xf32>
    %36 = arith.divf %34, %35 : vector<8x32xf32>
    %37 = vector.extract_strided_slice %30 {offsets = [0, 32], sizes = [8, 32], strides = [1, 1]} : vector<8x128xf32> to vector<8x32xf32>
    %38 = arith.negf %37 : vector<8x32xf32>
    %39 = math.exp %38 : vector<8x32xf32>
    %cst_35 = arith.constant 1.000000e+00 : f32
    %40 = vector.broadcast %cst_35 : f32 to vector<8x32xf32>
    %41 = arith.addf %40, %39 : vector<8x32xf32>
    %42 = arith.divf %40, %41 : vector<8x32xf32>
    %43 = vector.extract_strided_slice %30 {offsets = [0, 64], sizes = [8, 32], strides = [1, 1]} : vector<8x128xf32> to vector<8x32xf32>
    %44 = math.tanh %43 : vector<8x32xf32>
    %45 = vector.extract_strided_slice %30 {offsets = [0, 96], sizes = [8, 32], strides = [1, 1]} : vector<8x128xf32> to vector<8x32xf32>
    %46 = arith.negf %45 : vector<8x32xf32>
    %47 = math.exp %46 : vector<8x32xf32>
    %cst_36 = arith.constant 1.000000e+00 : f32
    %48 = vector.broadcast %cst_36 : f32 to vector<8x32xf32>
    %49 = arith.addf %48, %47 : vector<8x32xf32>
    %50 = arith.divf %48, %49 : vector<8x32xf32>
    %c0_37 = arith.constant 0 : index
    %c0_38 = arith.constant 0 : index
    %51 = vector.load %arg16[%c0_37, %c0_38] : memref<8x32xf32, #tpu.memory_space<vmem>>, vector<8x32xf32>
    %52 = arith.mulf %42, %51 : vector<8x32xf32>
    %53 = arith.mulf %36, %44 : vector<8x32xf32>
    %54 = arith.addf %52, %53 : vector<8x32xf32>
    %55 = math.tanh %54 : vector<8x32xf32>
    %56 = arith.mulf %50, %55 : vector<8x32xf32>
    %c0_39 = arith.constant 0 : index
    %c0_40 = arith.constant 0 : index
    %57 = vector.load %arg16[%c0_39, %c0_40] : memref<8x32xf32, #tpu.memory_space<vmem>>, vector<8x32xf32>
    tpu.vector_store %arg16[%c0_39, %c0_40], %54 {strides = array<i32>} : memref<8x32xf32, #tpu.memory_space<vmem>>, vector<8x32xf32>,
    %c0_41 = arith.constant 0 : index
    %c0_42 = arith.constant 0 : index
    %58 = vector.load %arg15[%c0_41, %c0_42] : memref<8x32xf32, #tpu.memory_space<vmem>>, vector<8x32xf32>
    tpu.vector_store %arg15[%c0_41, %c0_42], %56 {strides = array<i32>} : memref<8x32xf32, #tpu.memory_space<vmem>>, vector<8x32xf32>,
    %59 = arith.index_cast %c0_i32 : i32 to index
    %c0_43 = arith.constant 0 : index
    %c0_44 = arith.constant 0 : index
    %60 = vector.load %arg18[%59, %c0_43, %c0_44] : memref<2x8x32xf32, #tpu.memory_space<vmem>>, vector<1x8x32xf32>
    %61 = vector.shape_cast %60 : vector<1x8x32xf32> to vector<8x32xf32>
    %62 = vector.shape_cast %56 : vector<8x32xf32> to vector<1x8x32xf32>
    tpu.vector_store %arg18[%59, %c0_43, %c0_44], %62 {strides = array<i32>} : memref<2x8x32xf32, #tpu.memory_space<vmem>>, vector<1x8x32xf32>,
    %c1_i32 = arith.constant 1 : i32
    %63 = arith.index_cast %c1_i32 : i32 to index
    %c0_45 = arith.constant 0 : index
    %c0_46 = arith.constant 0 : index
    %64 = vector.load %arg17[%63, %c0_45, %c0_46] : memref<2x8x128xf32, #tpu.memory_space<vmem>>, vector<1x8x128xf32>
    %65 = vector.shape_cast %64 : vector<1x8x128xf32> to vector<8x128xf32>
    %c0_47 = arith.constant 0 : index
    %c0_48 = arith.constant 0 : index
    %66 = vector.load %arg15[%c0_47, %c0_48] : memref<8x32xf32, #tpu.memory_space<vmem>>, vector<8x32xf32>
    %c0_49 = arith.constant 0 : index
    %c0_50 = arith.constant 0 : index
    %67 = vector.load %arg7[%c0_49, %c0_50] : memref<32x128xf32, #tpu.memory_space<vmem>>, vector<32x128xf32>
    %cst_51 = arith.constant dense<0.000000e+00> : vector<8x128xf32>
    %68 = tpu.matmul %66, %67, %cst_51 {dimension_numbers = #tpu.dot_dimension_numbers<[1], [0], [0], [1], [0, 0, 1, 1], [], []>} : vector<8x32xf32>, vector<32x128xf32>, vector<8x128xf32> -> vector<8x128xf32>
    %69 = arith.addf %65, %68 : vector<8x128xf32>
    %70 = vector.extract_strided_slice %69 {offsets = [0, 0], sizes = [8, 32], strides = [1, 1]} : vector<8x128xf32> to vector<8x32xf32>
    %71 = arith.negf %70 : vector<8x32xf32>
    %72 = math.exp %71 : vector<8x32xf32>
    %cst_52 = arith.constant 1.000000e+00 : f32
    %73 = vector.broadcast %cst_52 : f32 to vector<8x32xf32>
    %74 = arith.addf %73, %72 : vector<8x32xf32>
    %75 = arith.divf %73, %74 : vector<8x32xf32>
    %76 = vector.extract_strided_slice %69 {offsets = [0, 32], sizes = [8, 32], strides = [1, 1]} : vector<8x128xf32> to vector<8x32xf32>
    %77 = arith.negf %76 : vector<8x32xf32>
    %78 = math.exp %77 : vector<8x32xf32>
    %cst_53 = arith.constant 1.000000e+00 : f32
    %79 = vector.broadcast %cst_53 : f32 to vector<8x32xf32>
    %80 = arith.addf %79, %78 : vector<8x32xf32>
    %81 = arith.divf %79, %80 : vector<8x32xf32>
    %82 = vector.extract_strided_slice %69 {offsets = [0, 64], sizes = [8, 32], strides = [1, 1]} : vector<8x128xf32> to vector<8x32xf32>
    %83 = math.tanh %82 : vector<8x32xf32>
    %84 = vector.extract_strided_slice %69 {offsets = [0, 96], sizes = [8, 32], strides = [1, 1]} : vector<8x128xf32> to vector<8x32xf32>
    %85 = arith.negf %84 : vector<8x32xf32>
    %86 = math.exp %85 : vector<8x32xf32>
    %cst_54 = arith.constant 1.000000e+00 : f32
    %87 = vector.broadcast %cst_54 : f32 to vector<8x32xf32>
    %88 = arith.addf %87, %86 : vector<8x32xf32>
    %89 = arith.divf %87, %88 : vector<8x32xf32>
    %c0_55 = arith.constant 0 : index
    %c0_56 = arith.constant 0 : index
    %90 = vector.load %arg16[%c0_55, %c0_56] : memref<8x32xf32, #tpu.memory_space<vmem>>, vector<8x32xf32>
    %91 = arith.mulf %81, %90 : vector<8x32xf32>
    %92 = arith.mulf %75, %83 : vector<8x32xf32>
    %93 = arith.addf %91, %92 : vector<8x32xf32>
    %94 = math.tanh %93 : vector<8x32xf32>
    %95 = arith.mulf %89, %94 : vector<8x32xf32>
    %c0_57 = arith.constant 0 : index
    %c0_58 = arith.constant 0 : index
    %96 = vector.load %arg16[%c0_57, %c0_58] : memref<8x32xf32, #tpu.memory_space<vmem>>, vector<8x32xf32>
    tpu.vector_store %arg16[%c0_57, %c0_58], %93 {strides = array<i32>} : memref<8x32xf32, #tpu.memory_space<vmem>>, vector<8x32xf32>,
    %c0_59 = arith.constant 0 : index
    %c0_60 = arith.constant 0 : index
    %97 = vector.load %arg15[%c0_59, %c0_60] : memref<8x32xf32, #tpu.memory_space<vmem>>, vector<8x32xf32>
    tpu.vector_store %arg15[%c0_59, %c0_60], %95 {strides = array<i32>} : memref<8x32xf32, #tpu.memory_space<vmem>>, vector<8x32xf32>,
    %98 = arith.index_cast %c1_i32 : i32 to index
    %c0_61 = arith.constant 0 : index
    %c0_62 = arith.constant 0 : index
    %99 = vector.load %arg18[%98, %c0_61, %c0_62] : memref<2x8x32xf32, #tpu.memory_space<vmem>>, vector<1x8x32xf32>
    %100 = vector.shape_cast %99 : vector<1x8x32xf32> to vector<8x32xf32>
    %101 = vector.shape_cast %95 : vector<8x32xf32> to vector<1x8x32xf32>
    tpu.vector_store %arg18[%98, %c0_61, %c0_62], %101 {strides = array<i32>} : memref<2x8x32xf32, #tpu.memory_space<vmem>>, vector<1x8x32xf32>,
    %c2_i32 = arith.constant 2 : i32
    %c0_63 = arith.constant 0 : index
    %c0_64 = arith.constant 0 : index
    %c0_65 = arith.constant 0 : index
    %102 = vector.load %arg18[%c0_63, %c0_64, %c0_65] : memref<2x8x32xf32, #tpu.memory_space<vmem>>, vector<2x8x32xf32>
    %103 = vector.shape_cast %102 : vector<2x8x32xf32> to vector<2x256xf32>
    %c0_66 = arith.constant 0 : index
    %c0_67 = arith.constant 0 : index
    %104 = vector.load %arg9[%c0_66, %c0_67] : memref<256x1024xf32, #tpu.memory_space<vmem>>, vector<256x1024xf32>
    %cst_68 = arith.constant dense<0.000000e+00> : vector<2x1024xf32>
    %105 = tpu.matmul %103, %104, %cst_68 {dimension_numbers = #tpu.dot_dimension_numbers<[1], [0], [0], [1], [0, 0, 1, 1], [], []>} : vector<2x256xf32>, vector<256x1024xf32>, vector<2x1024xf32> -> vector<2x1024xf32>
    %c0_69 = arith.constant 0 : index
    %c0_70 = arith.constant 0 : index
    %106 = vector.load %arg10[%c0_69, %c0_70] : memref<1x1024xf32, #tpu.memory_space<vmem>>, vector<1x1024xf32>
    %107 = vector.broadcast %106 : vector<1x1024xf32> to vector<2x1024xf32>
    %108 = arith.addf %105, %107 : vector<2x1024xf32>
    %c0_71 = arith.constant 0 : index
    %c0_72 = arith.constant 0 : index
    %109 = vector.load %arg11[%c0_71, %c0_72] : memref<1024x128xf32, #tpu.memory_space<vmem>>, vector<1024x128xf32>
    %cst_73 = arith.constant dense<0.000000e+00> : vector<2x128xf32>
    %110 = tpu.matmul %10, %109, %cst_73 {dimension_numbers = #tpu.dot_dimension_numbers<[1], [0], [0], [1], [0, 0, 1, 1], [], []>} : vector<2x1024xf32>, vector<1024x128xf32>, vector<2x128xf32> -> vector<2x128xf32>
    %c0_74 = arith.constant 0 : index
    %c0_75 = arith.constant 0 : index
    %111 = vector.load %arg12[%c0_74, %c0_75] : memref<1024x128xf32, #tpu.memory_space<vmem>>, vector<1024x128xf32>
    %cst_76 = arith.constant dense<0.000000e+00> : vector<2x128xf32>
    %112 = tpu.matmul %108, %111, %cst_76 {dimension_numbers = #tpu.dot_dimension_numbers<[1], [0], [0], [1], [0, 0, 1, 1], [], []>} : vector<2x1024xf32>, vector<1024x128xf32>, vector<2x128xf32> -> vector<2x128xf32>
    %113 = arith.addf %110, %112 : vector<2x128xf32>
    %c0_77 = arith.constant 0 : index
    %c0_78 = arith.constant 0 : index
    %114 = vector.load %arg13[%c0_77, %c0_78] : memref<1x128xf32, #tpu.memory_space<vmem>>, vector<1x128xf32>
    %115 = vector.broadcast %114 : vector<1x128xf32> to vector<2x128xf32>
    %116 = arith.addf %113, %115 : vector<2x128xf32>
    %c0_79 = arith.constant 0 : index
    %c0_80 = arith.constant 0 : index
    %117 = vector.load %arg14[%c0_79, %c0_80] : memref<2x128xf32, #tpu.memory_space<vmem>>, vector<2x128xf32>
    tpu.vector_store %arg14[%c0_79, %c0_80], %116 {strides = array<i32>} : memref<2x128xf32, #tpu.memory_space<vmem>>, vector<2x128xf32>,
    return
  }
}

</mosaic_0001>

<bundles_post_ra>
// kernel: tpu_custom_call.1
= control target key start
LH: loop header
LB: loop body
LE: loop exit
PB: predicated region body
PF: predicated region fallthrough
CT: control target
= control target key end

     0   :  { %19 = vsyncpa [#allocation7], 0  ;;  %s4189_s0 = inlined_call_operand.hbm [shape: f32[2,48], index: 0, kind: input, shape index: {}]   ;;  %s4190_s1 = inlined_call_operand.hbm [shape: f32[2,8,16], index: 1, kind: input, shape index: {}]   ;;  %s4191_s2 = inlined_call_operand.hbm [shape: f32[48,64], index: 2, kind: input, shape index: {}]   ;;  %s4192_s3 = inlined_call_operand.vmem [shape: f32[1,64], index: 3, kind: input, shape index: {}]   ;;  %s4193_s4 = inlined_call_operand.hbm [shape: f32[64,1024], index: 4, kind: input, shape index: {}]   ;;  %s4194_s5 = inlined_call_operand.hbm [shape: f32[1,1024], index: 5, kind: input, shape index: {}]   ;;  %s4195_s6 = inlined_call_operand.vmem [shape: f32[16,128], index: 6, kind: input, shape index: {}]   ;;  %s4196_s7 = inlined_call_operand.hbm [shape: f32[32,128], index: 7, kind: input, shape index: {}]   ;;  %s4197_s8 = inlined_call_operand.vmem [shape: f32[1,128], index: 8, kind: input, shape index: {}]   ;;  %s4198_s9 = inlined_call_operand.hbm [shape: f32[256,1024], index: 9, kind: input, shape index: {}]   ;;  %s4199_s10 = inlined_call_operand.vmem [shape: f32[1,1024], index: 10, kind: input, shape index: {}]   ;;  %s4200_s11 = inlined_call_operand.hbm [shape: f32[1024,128], index: 11, kind: input, shape index: {}]   ;;  %s4201_s12 = inlined_call_operand.hbm [shape: f32[1024,128], index: 12, kind: input, shape index: {}]   ;;  %s4202_s13 = inlined_call_operand.vmem [shape: f32[1,128], index: 13, kind: input, shape index: {}]   ;;  %s4203_s14 = inlined_call_operand.hbm [shape: f32[2,128], index: 14, kind: output, shape index: {}]  }
   0x1   :  { %20 = vsyncpa [#allocation10], 0 }
   0x2   :  { %21 = vsyncpa [#allocation13], 0 }
   0x3   :  { %22 = vsyncpa [#allocation16], 0 }
   0x4   :  { %23 = vsyncpa [#allocation19], 0 }
   0x5   :  { %24 = vsyncpa [#allocation8], 0  ;;  %s3758_s29 = smov [#allocation9]   ;;  %s3526_s17 = scalar_lea.hbm %s4190_s1, 256 }
   0x6   :  { %s40_s30 = sshll.u32 %s3758_s29, 4  ;;  %p3527_p0 = scmp.ne.s32.totalorder %s4190_s1, %s3526_s17  ;;  %s41_s30 = int_to_ptr.vmem [resolvable:$true] %s40_s30 }
   0x7   :  { %p3530_p1 = scmp.lt.u32.totalorder %s3526_s17, %s4190_s1 }
   0x9   :  { %p3532_p2 = pnand %p3530_p1, %p3527_p0 }
   0xb   :  { %3535 = shalt.err (!%p3532_p2)
}
   0xc   :  { %s3536_s22 = scalar_lea.vmem %s41_s30, 256  ;;  %p3541_p4 = scmp.lt.s32.totalorder %s41_s30, %s41_s30 }
   0xd   :  { %p3537_p3 = scmp.ne.s32.totalorder %s41_s30, %s3536_s22  ;;  %p3542_p5 = scmp.lt.s32.totalorder %s3536_s22, %s3536_s22 }
   0xf   :  { %p3543_p6 = por %p3542_p5, %p3541_p4 }
  0x11   :  { %p3544_p7 = pnand %p3543_p6, %p3537_p3 }
  0x13   :  { %3547 = shalt.err (!%p3544_p7)
}
  0x14   :  { %s4204_s23 = smov 128   ;;  %s3760_s24 = smov 8  }
  0x15   :  { %46 = dma.hbm_to_vmem [thread:$0]  %s4190_s1, 256, %s41_s30, [#allocation10], %s4204_s23, %s4204_s23, %s3760_s24  }
  0x16   :  { %s3761_s27 = smov [#allocation12]   ;;  %s3548_s16 = scalar_lea.hbm %s4193_s4, 8192 }
  0x17   :  { %s66_s28 = sshll.u32 %s3761_s27, 4  ;;  %p3549_p8 = scmp.ne.s32.totalorder %s4193_s4, %s3548_s16  ;;  %s67_s28 = int_to_ptr.vmem [resolvable:$true] %s66_s28 }
  0x18   :  { %p3552_p9 = scmp.lt.u32.totalorder %s3548_s16, %s4193_s4 }
  0x1a   :  { %p3554_p10 = pnand %p3552_p9, %p3549_p8 }
  0x1c   :  { %3557 = shalt.err (!%p3554_p10)
}
  0x1d   :  { %s3558_s21 = scalar_lea.vmem %s67_s28, 8192  ;;  %p3563_p12 = scmp.lt.s32.totalorder %s67_s28, %s67_s28 }
  0x1e   :  { %p3559_p11 = scmp.ne.s32.totalorder %s67_s28, %s3558_s21  ;;  %p3564_p13 = scmp.lt.s32.totalorder %s3558_s21, %s3558_s21 }
  0x20   :  { %p3565_p0 = por %p3564_p13, %p3563_p12 }
  0x22   :  { %p3566_p1 = pnand %p3565_p0, %p3559_p11 }
  0x24   :  { %3569 = shalt.err (!%p3566_p1)
}
  0x25   :  { %s3762_s1 = smov 1024   ;;  %s3763_s30 = smov 64  }
  0x26   :  { %72 = dma.hbm_to_vmem [thread:$0]  %s4193_s4, 8192, %s67_s28, [#allocation13], %s3762_s1, %s3762_s1, %s3763_s30  }
  0x27   :  { %s3764_s26 = smov [#allocation15]   ;;  %s3765_s29 = smov [#allocation18]  }
  0x28   :  { %s90_s27 = sshll.u32 %s3764_s26, 4  ;;  %s118_s15 = sshll.u32 %s3765_s29, 4  ;;  %s91_s27 = int_to_ptr.vmem [resolvable:$true] %s90_s27  ;;  %s3884_s15 = int_to_ptr.vmem [resolvable:$true] %s118_s15 }
  0x29   :  { %s3570_s18 = scalar_lea.hbm %s4196_s7, 512 }
  0x2a   :  { %p3571_p2 = scmp.ne.s32.totalorder %s4196_s7, %s3570_s18  ;;  %p3574_p3 = scmp.lt.u32.totalorder %s3570_s18, %s4196_s7 }
  0x2c   :  { %p3576_p4 = pnand %p3574_p3, %p3571_p2 }
  0x2e   :  { %3579 = shalt.err (!%p3576_p4)
}
  0x2f   :  { %s3580_s4 = scalar_lea.vmem %s91_s27, 512  ;;  %p3585_p6 = scmp.lt.s32.totalorder %s91_s27, %s91_s27 }
  0x30   :  { %p3581_p5 = scmp.ne.s32.totalorder %s91_s27, %s3580_s4  ;;  %p3586_p7 = scmp.lt.s32.totalorder %s3580_s4, %s3580_s4 }
  0x32   :  { %p3587_p8 = por %p3586_p7, %p3585_p6 }
  0x34   :  { %p3588_p9 = pnand %p3587_p8, %p3581_p5 }
  0x36   :  { %3591 = shalt.err (!%p3588_p9)
}
  0x37   :  { %s4206_s28 = smov 128   ;;  %s3592_s23 = scalar_lea.hbm %s4200_s11, 16384 }
  0x38   :  { %96 = dma.hbm_to_vmem [thread:$0]  %s4196_s7, 512, %s91_s27, [#allocation16], %s4206_s28, %s4206_s28, %s3760_s24  }
  0x39   :  { %p3593_p10 = scmp.ne.s32.totalorder %s4200_s11, %s3592_s23  ;;  %p3596_p11 = scmp.lt.u32.totalorder %s3592_s23, %s4200_s11 }
  0x3b   :  { %p3598_p12 = pnand %p3596_p11, %p3593_p10 }
  0x3d   :  { %3601 = shalt.err (!%p3598_p12)
}
  0x3e   :  { %s3602_s20 = scalar_lea.vmem %s3884_s15, 16384  ;;  %p3607_p0 = scmp.lt.s32.totalorder %s3884_s15, %s3884_s15 }
  0x3f   :  { %p3603_p13 = scmp.ne.s32.totalorder %s3884_s15, %s3602_s20  ;;  %p3608_p1 = scmp.lt.s32.totalorder %s3602_s20, %s3602_s20 }
  0x41   :  { %p3609_p2 = por %p3608_p1, %p3607_p0 }
  0x43   :  { %p3610_p3 = pnand %p3609_p2, %p3603_p13 }
  0x45   :  { %3613 = shalt.err (!%p3610_p3)
}
  0x46   :  { %124 = dma.hbm_to_vmem [thread:$0]  %s4200_s11, 16384, %s3884_s15, [#allocation19], %s4206_s28, %s4206_s28, %s3760_s24  }
  0x47   :  { %s3766_s21 = smov [#allocation6]   ;;  %s3767_s22 = smov [#allocation11]  }
  0x48   :  { %s31_s4 = sshll.u32 %s3766_s21, 4  ;;  %s52_s25 = sshll.u32 %s3767_s22, 4  ;;  %s32_s4 = int_to_ptr.vmem [resolvable:$true] %s31_s4  ;;  %s3921_s25 = int_to_ptr.vmem [resolvable:$true] %s52_s25 }
  0x49   :  { %s3614_s23 = scalar_lea.hbm %s4189_s0, 32 }
  0x4a   :  { %p3615_p4 = scmp.ne.s32.totalorder %s4189_s0, %s3614_s23  ;;  %p3618_p5 = scmp.lt.u32.totalorder %s3614_s23, %s4189_s0 }
  0x4c   :  { %p3620_p6 = pnand %p3618_p5, %p3615_p4 }
  0x4e   :  { %3623 = shalt.err (!%p3620_p6)
}
  0x4f   :  { %s3624_s11 = scalar_lea.vmem %s32_s4, 32  ;;  %p3629_p8 = scmp.lt.s32.totalorder %s32_s4, %s32_s4 }
  0x50   :  { %p3625_p7 = scmp.ne.s32.totalorder %s32_s4, %s3624_s11  ;;  %p3630_p9 = scmp.lt.s32.totalorder %s3624_s11, %s3624_s11 }
  0x52   :  { %p3631_p10 = por %p3630_p9, %p3629_p8 }
  0x54   :  { %p3632_p11 = pnand %p3631_p10, %p3625_p7 }
  0x56   :  { %3635 = shalt.err (!%p3632_p11)
}
  0x57   :  { %34 = dma.hbm_to_vmem [thread:$0]  %s4189_s0, 32, %s32_s4, [#allocation7]  }
  0x58   :  { %s3636_s21 = scalar_lea.hbm %s4191_s2, 768 }
  0x59   :  { %p3637_p12 = scmp.ne.s32.totalorder %s4191_s2, %s3636_s21  ;;  %p3640_p13 = scmp.lt.u32.totalorder %s3636_s21, %s4191_s2 }
  0x5b   :  { %p3642_p0 = pnand %p3640_p13, %p3637_p12 }
  0x5d   :  { %3645 = shalt.err (!%p3642_p0)
}
  0x5e   :  { %s3646_s16 = scalar_lea.vmem %s3921_s25, 768  ;;  %p3651_p2 = scmp.lt.s32.totalorder %s3921_s25, %s3921_s25 }
  0x5f   :  { %p3647_p1 = scmp.ne.s32.totalorder %s3921_s25, %s3646_s16  ;;  %p3652_p3 = scmp.lt.s32.totalorder %s3646_s16, %s3646_s16 }
  0x61   :  { %p3653_p4 = por %p3652_p3, %p3651_p2 }
  0x63   :  { %p3654_p5 = pnand %p3653_p4, %p3647_p1 }
  0x65   :  { %3657 = shalt.err (!%p3654_p5)
}
  0x66   :  { %58 = dma.hbm_to_vmem [thread:$0]  %s4191_s2, 768, %s3921_s25, [#allocation10], %s4206_s28, %s4206_s28, %s3760_s24  }
  0x67   :  { %s3768_s17 = smov [#allocation14]   ;;  %s3769_s19 = smov [#allocation17]  }
  0x68   :  { %s79_s18 = sshll.u32 %s3768_s17, 4  ;;  %s104_s11 = sshll.u32 %s3769_s19, 4  ;;  %s80_s18 = int_to_ptr.vmem [resolvable:$true] %s79_s18  ;;  %s3955_s11 = int_to_ptr.vmem [resolvable:$true] %s104_s11 }
  0x69   :  { %s3658_s7 = scalar_lea.hbm %s4194_s5, 128 }
  0x6a   :  { %p3659_p6 = scmp.ne.s32.totalorder %s4194_s5, %s3658_s7  ;;  %p3662_p7 = scmp.lt.u32.totalorder %s3658_s7, %s4194_s5 }
  0x6c   :  { %p3664_p8 = pnand %p3662_p7, %p3659_p6 }
  0x6e   :  { %3667 = shalt.err (!%p3664_p8)
}
  0x6f   :  { %s3668_s2 = scalar_lea.vmem %s80_s18, 128  ;;  %p3673_p10 = scmp.lt.s32.totalorder %s80_s18, %s80_s18 }
  0x70   :  { %p3669_p9 = scmp.ne.s32.totalorder %s80_s18, %s3668_s2  ;;  %p3674_p11 = scmp.lt.s32.totalorder %s3668_s2, %s3668_s2 }
  0x72   :  { %p3675_p12 = por %p3674_p11, %p3673_p10 }
  0x74   :  { %p3676_p13 = pnand %p3675_p12, %p3669_p9 }
  0x76   :  { %3679 = shalt.err (!%p3676_p13)
}
  0x77   :  { %82 = dma.hbm_to_vmem [thread:$0]  %s4194_s5, 128, %s80_s18, [#allocation13]  }
  0x78   :  { %s3680_s0 = scalar_lea.hbm %s4198_s9, 32768 }
  0x79   :  { %p3681_p0 = scmp.ne.s32.totalorder %s4198_s9, %s3680_s0  ;;  %p3684_p1 = scmp.lt.u32.totalorder %s3680_s0, %s4198_s9 }
  0x7b   :  { %p3686_p2 = pnand %p3684_p1, %p3681_p0 }
  0x7d   :  { %3689 = shalt.err (!%p3686_p2)
}
  0x7e   :  { %s3690_s20 = scalar_lea.vmem %s3955_s11, 32768  ;;  %p3695_p4 = scmp.lt.s32.totalorder %s3955_s11, %s3955_s11 }
  0x7f   :  { %p3691_p3 = scmp.ne.s32.totalorder %s3955_s11, %s3690_s20  ;;  %p3696_p5 = scmp.lt.s32.totalorder %s3690_s20, %s3690_s20 }
  0x81   :  { %p3697_p6 = por %p3696_p5, %p3695_p4 }
  0x83   :  { %p3698_p7 = pnand %p3697_p6, %p3691_p3 }
  0x85   :  { %3701 = shalt.err (!%p3698_p7)
}
  0x86   :  { %110 = dma.hbm_to_vmem [thread:$0]  %s4198_s9, 32768, %s3955_s11, [#allocation16], %s3762_s1, %s3762_s1, %s3763_s30  }
  0x87   :  { %s3770_s7 = smov [#allocation20]   ;;  %s3702_s26 = scalar_lea.hbm %s4201_s12, 16384 }
  0x88   :  { %s130_s27 = sshll.u32 %s3770_s7, 4  ;;  %p3703_p8 = scmp.ne.s32.totalorder %s4201_s12, %s3702_s26  ;;  %s131_s27 = int_to_ptr.vmem [resolvable:$true] %s130_s27 }
  0x89   :  { %p3706_p9 = scmp.lt.u32.totalorder %s3702_s26, %s4201_s12 }
  0x8b   :  { %p3708_p10 = pnand %p3706_p9, %p3703_p8 }
  0x8d   :  { %3711 = shalt.err (!%p3708_p10)
}
  0x8e   :  { %s3712_s16 = scalar_lea.vmem %s131_s27, 16384  ;;  %p3717_p12 = scmp.lt.s32.totalorder %s131_s27, %s131_s27 }
  0x8f   :  { %p3713_p11 = scmp.ne.s32.totalorder %s131_s27, %s3712_s16  ;;  %p3718_p13 = scmp.lt.s32.totalorder %s3712_s16, %s3712_s16 }
  0x91   :  { %p3719_p0 = por %p3718_p13, %p3717_p12 }
  0x93   :  { %p3720_p1 = pnand %p3719_p0, %p3713_p11 }
  0x95   :  { %3723 = shalt.err (!%p3720_p1)
}
  0x96   :  { %136 = dma.hbm_to_vmem [thread:$0]  %s4201_s12, 16384, %s131_s27, [#allocation19], %s4206_s28, %s4206_s28, %s3760_s24  }
  0x97   :  { %3746 = dma.done.wait [#allocation7], 32  }
  0x98   :  { %3747 = vsyncadd [#allocation7], 4294967264 }
  0x99   :  { %3748 = dma.done.wait [#allocation10], 1024  }
  0x9a   :  { %3749 = vsyncadd [#allocation10], 4294966272 }
  0x9b   :  { %3750 = dma.done.wait [#allocation13], 8320  }
  0x9c   :  { %3751 = vsyncadd [#allocation13], 4294958976 }
  0x9d   :  { %3752 = dma.done.wait [#allocation16], 33280  }
  0x9e   :  { %3753 = vsyncadd [#allocation16], 4294934016 }
  0x9f   :  { %3754 = dma.done.wait [#allocation19], 32768  }
  0xa0   :  { %3755 = vsyncadd [#allocation19], 4294934528  ;;  %v3771_v0 = vmov 0.0|0.0   ;;  %vm3772_vm0 = vmmov 0   ;;  %v3773_v1 = vmov 0.0   ;;  %v167_v2 = vld [vmem:[#allocation11] sm:$0xff] }
  0xa1   :  { %2872 = vmatprep.subr.bf16.mxu0 %v3771_v0  ;;  %2840 = vmatprep.mubr.msk.f32.mxu0 %vm3772_vm0, %v3773_v1  ;;  %v168_v3 = vld [vmem:[#allocation11 + $0x8] sm:$0xff]  ;;  %v169_v4 = vld [vmem:[#allocation11 + $0x10] sm:$0xff]  ;;  %v170_v6 = vld [vmem:[#allocation11 + $0x18] sm:$0xff]  ;;  %vm180_vm1 = vcmask 392192   ;;  %vm743_vm2 = vcmask 261120   ;;  %vm360_vm3 = vcmask 523264  }
  0xa2   :  { %428 = vmatprep.mubr.f32.mxu1 %v3773_v1  ;;  %v2873_v5 = vpack.c.bf16 %v168_v3, %v167_v2  ;;  %v255_v7 = vld [vmem:[#allocation12 + $0x8] sm:$0xff]  ;;  %v2876_v9 = vpack.c.bf16 %v170_v6, %v169_v4  ;;  %v171_v10 = vld [vmem:[#allocation11 + $0x20] sm:$0xff]  ;;  %v254_v12 = vld [vmem:[#allocation12] sm:$0xff]  ;;  %744 = vst.msk [vmem:[#allocation2] sm:$0xff] %vm743_vm2, %v3773_v1  ;;  %vm659_vm4 = vcmask 130048   ;;  %s3774_s17 = smov 32  }
  0xa3   :  { %v263_v8 = vld [vmem:[#allocation12 + $0x48] sm:$0xff]  ;;  %v172_v13 = vld [vmem:[#allocation11 + $0x28] sm:$0xff]  ;;  %v262_v15 = vld [vmem:[#allocation12 + $0x40] sm:$0xff]  ;;  %745 = vst.msk [vmem:[#allocation3] sm:$0xff] %vm743_vm2, %v3773_v1  ;;  %vm1082_vm5 = vcmask 785408   ;;  %s3778_s20 = smov [#allocation21]  }
  0xa4   :  { %2874 = vmatpush3.bf16.msra.mxu0 %v2873_v5  ;;  %v2881_v11 = vpack.c.bf16 %v263_v8, %v255_v7  ;;  %v257_v14 = vld [vmem:[#allocation12 + $0x18] sm:$0xff]  ;;  %v2883_v17 = vpack.c.bf16 %v262_v15, %v254_v12  ;;  %v271_v18 = vld [vmem:[#allocation12 + $0x88] sm:$0xff]  ;;  %v270_v21 = vld [vmem:[#allocation12 + $0x80] sm:$0xff]  ;;  %v2879_v23 = vpack.c.bf16 %v172_v13, %v171_v10  ;;  %s2500_s5 = sshll.u32 %s3778_s20, 4  ;;  %s2501_s5 = int_to_ptr.vmem [resolvable:$true] %s2500_s5 }
  0xa5   :  { %2875 = vmatprep.subr.bf16.mxu0 %v3771_v0  ;;  %v265_v16 = vld [vmem:[#allocation12 + $0x58] sm:$0xff]  ;;  %v279_v19 = vld [vmem:[#allocation12 + $0xc8] sm:$0xff]  ;;  %v278_v22 = vld [vmem:[#allocation12 + $0xc0] sm:$0xff]  ;;  %s3724_s18 = scalar_lea.vmem %s2501_s5, 32  ;;  %p3729_p3 = scmp.lt.s32.totalorder %s2501_s5, %s2501_s5 }
  0xa6   :  { %2882 = vmatprep.subr.bf16.mxu1 %v2881_v11  ;;  %v2885_v20 = vpack.c.bf16 %v279_v19, %v271_v18  ;;  %v256_v24 = vld [vmem:[#allocation12 + $0x10] sm:$0xff]  ;;  %v2887_v25 = vpack.c.bf16 %v278_v22, %v270_v21  ;;  %v287_v26 = vld [vmem:[#allocation12 + $0x108] sm:$0xff]  ;;  %v2897_v27 = vpack.c.bf16 %v265_v16, %v257_v14  ;;  %v273_v29 = vld [vmem:[#allocation12 + $0x98] sm:$0xff]  ;;  %p3725_p2 = scmp.ne.s32.totalorder %s2501_s5, %s3724_s18  ;;  %p3730_p4 = scmp.lt.s32.totalorder %s3724_s18, %s3724_s18 }
  0xa7   :  { %2884 = vmatpush1.bf16.msra.mxu1 %v2883_v17  ;;  %v264_v28 = vld [vmem:[#allocation12 + $0x50] sm:$0xff]  ;;  %v295_v30 = vld [vmem:[#allocation12 + $0x148] sm:$0xff]  ;;  %v281_v31 = vld [vmem:[#allocation12 + $0xd8] sm:$0xff] }
  0xa8   :  { %2877 = vmatpush3.bf16.msra.mxu0 %v2876_v9  ;;  %2886 = vmatprep.subr.bf16.mxu1 %v2885_v20  ;;  %v2889_v32 = vpack.c.bf16 %v295_v30, %v287_v26  ;;  %v286_v33 = vld [vmem:[#allocation12 + $0x100] sm:$0xff]  ;;  %v303_v35 = vld [vmem:[#allocation12 + $0x188] sm:$0xff]  ;;  %v166_v37 = vld [vmem:[#allocation6] sm:$0x3]  ;;  %v2899_v38 = vpack.c.bf16 %v264_v28, %v256_v24  ;;  %v2901_v41 = vpack.c.bf16 %v281_v31, %v273_v29  ;;  %p3731_p5 = por %p3730_p4, %p3729_p3 }
  0xa9   :  { %2878 = vmatprep.subr.bf16.mxu0 %v3771_v0  ;;  %v294_v34 = vld [vmem:[#allocation12 + $0x140] sm:$0xff]  ;;  %v311_v36 = vld [vmem:[#allocation12 + $0x1c8] sm:$0xff]  ;;  %v272_v39 = vld [vmem:[#allocation12 + $0x90] sm:$0xff] }
  0xaa   :  { %v2891_v40 = vpack.c.bf16 %v294_v34, %v286_v33  ;;  %v280_v42 = vld [vmem:[#allocation12 + $0xd0] sm:$0xff]  ;;  %v2893_v43 = vpack.c.bf16 %v311_v36, %v303_v35  ;;  %v302_v44 = vld [vmem:[#allocation12 + $0x180] sm:$0xff]  ;;  %v289_v46 = vld [vmem:[#allocation12 + $0x118] sm:$0xff]  ;;  %p3732_p6 = pnand %p3731_p5, %p3725_p2 }
  0xab   :  { %2888 = vmatpush1.bf16.msra.mxu1 %v2887_v25  ;;  %v310_v45 = vld [vmem:[#allocation12 + $0x1c0] sm:$0xff]  ;;  %v297_v47 = vld [vmem:[#allocation12 + $0x158] sm:$0xff]  ;;  %v2903_v48 = vpack.c.bf16 %v280_v42, %v272_v39  ;;  %v288_v51 = vld [vmem:[#allocation12 + $0x110] sm:$0xff] }
  0xac   :  { %2880 = vmatpush3.bf16.msra.mxu0 %v2879_v23  ;;  %2890 = vmatprep.subr.bf16.mxu1 %v2889_v32  ;;  %v2895_v49 = vpack.c.bf16 %v310_v45, %v302_v44  ;;  %v2905_v50 = vpack.c.bf16 %v297_v47, %v289_v46  ;;  %v296_v52 = vld [vmem:[#allocation12 + $0x150] sm:$0xff]  ;;  %v305_v53 = vld [vmem:[#allocation12 + $0x198] sm:$0xff]  ;;  %v259_v60 = vld [vmem:[#allocation12 + $0x28] sm:$0xff] }
  0xad   :  { %2898 = vmatprep.subr.bf16.mxu0 %v2897_v27  ;;  %v313_v54 = vld [vmem:[#allocation12 + $0x1d8] sm:$0xff]  ;;  %v2907_v55 = vpack.c.bf16 %v296_v52, %v288_v51  ;;  %v304_v57 = vld [vmem:[#allocation12 + $0x190] sm:$0xff]  ;;  %v267_v61 = vld [vmem:[#allocation12 + $0x68] sm:$0xff] }
  0xae   :  { %v2909_v56 = vpack.c.bf16 %v313_v54, %v305_v53  ;;  %v312_v58 = vld [vmem:[#allocation12 + $0x1d0] sm:$0xff]  ;;  %v261_v62 = vld [vmem:[#allocation12 + $0x38] sm:$0xff]  ;;  %v2913_v63 = vpack.c.bf16 %v267_v61, %v259_v60  ;;  %v2513_v4 = vld [vmem:[%s4192_s3] ss:$0 sm:$0xff] }
  0xaf   :  { %2841 = vmatmul.mubr.msk.f32.vlgmr.msra.gmra.mrb[0].mxu0 %vm180_vm1, %v166_v37  ;;  %2892 = vmatpush1.bf16.msra.mxu1 %v2891_v40  ;;  %v2911_v59 = vpack.c.bf16 %v312_v58, %v304_v57  ;;  %v269_v2 = vld [vmem:[#allocation12 + $0x78] sm:$0xff]  ;;  %v258_v5 = vld [vmem:[#allocation12 + $0x20] sm:$0xff]  ;;  %v260_v7 = vld [vmem:[#allocation12 + $0x30] sm:$0xff] }
  0xb0   :  { %2900 = vmatpush1.bf16.msra.mxu0 %v2899_v38  ;;  %2894 = vmatprep.subr.bf16.mxu1 %v2893_v43  ;;  %v2929_v3 = vpack.c.bf16 %v269_v2, %v261_v62  ;;  %v266_v6 = vld [vmem:[#allocation12 + $0x60] sm:$0xff]  ;;  %v268_v8 = vld [vmem:[#allocation12 + $0x70] sm:$0xff]  ;;  %v275_v9 = vld [vmem:[#allocation12 + $0xa8] sm:$0xff] }
  0xb1   :  { %2902 = vmatprep.subr.bf16.mxu0 %v2901_v41  ;;  %499 = vmatprep.mubr.f32.mxu0 %v3773_v1  ;;  %v283_v10 = vld [vmem:[#allocation12 + $0xe8] sm:$0xff]  ;;  %v277_v11 = vld [vmem:[#allocation12 + $0xb8] sm:$0xff]  ;;  %v2915_v14 = vpack.c.bf16 %v266_v6, %v258_v5  ;;  %v2931_v15 = vpack.c.bf16 %v268_v8, %v260_v7  ;;  %v274_v16 = vld [vmem:[#allocation12 + $0xa0] sm:$0xff] }
  0xb2   :  { %v285_v12 = vld [vmem:[#allocation12 + $0xf8] sm:$0xff]  ;;  %v282_v17 = vld [vmem:[#allocation12 + $0xe0] sm:$0xff]  ;;  %v2917_v20 = vpack.c.bf16 %v283_v10, %v275_v9  ;;  %v276_v22 = vld [vmem:[#allocation12 + $0xb0] sm:$0xff] }
  0xb3   :  { %2896 = vmatpush1.bf16.msra.mxu1 %v2895_v49  ;;  %v2933_v21 = vpack.c.bf16 %v285_v12, %v277_v11  ;;  %v284_v23 = vld [vmem:[#allocation12 + $0xf0] sm:$0xff]  ;;  %v291_v24 = vld [vmem:[#allocation12 + $0x128] sm:$0xff]  ;;  %v293_v26 = vld [vmem:[#allocation12 + $0x138] sm:$0xff]  ;;  %v2919_v28 = vpack.c.bf16 %v282_v17, %v274_v16 }
  0xb4   :  { %2904 = vmatpush1.bf16.msra.mxu0 %v2903_v48  ;;  %2914 = vmatprep.subr.bf16.mxu1 %v2913_v63  ;;  %v299_v25 = vld [vmem:[#allocation12 + $0x168] sm:$0xff]  ;;  %v301_v27 = vld [vmem:[#allocation12 + $0x178] sm:$0xff]  ;;  %v2935_v29 = vpack.c.bf16 %v284_v23, %v276_v22  ;;  %v290_v30 = vld [vmem:[#allocation12 + $0x120] sm:$0xff] }
  0xb5   :  { %2906 = vmatprep.subr.bf16.mxu0 %v2905_v50  ;;  %v298_v31 = vld [vmem:[#allocation12 + $0x160] sm:$0xff]  ;;  %v2921_v32 = vpack.c.bf16 %v299_v25, %v291_v24  ;;  %v2937_v33 = vpack.c.bf16 %v301_v27, %v293_v26  ;;  %v292_v34 = vld [vmem:[#allocation12 + $0x130] sm:$0xff]  ;;  %v307_v36 = vld [vmem:[#allocation12 + $0x1a8] sm:$0xff] }
  0xb6   :  { %v300_v35 = vld [vmem:[#allocation12 + $0x170] sm:$0xff]  ;;  %v315_v37 = vld [vmem:[#allocation12 + $0x1e8] sm:$0xff]  ;;  %v309_v38 = vld [vmem:[#allocation12 + $0x1b8] sm:$0xff]  ;;  %v2923_v40 = vpack.c.bf16 %v298_v31, %v290_v30 }
  0xb7   :  { %v317_v39 = vld [vmem:[#allocation12 + $0x1f8] sm:$0xff]  ;;  %v2939_v41 = vpack.c.bf16 %v300_v35, %v292_v34  ;;  %v306_v42 = vld [vmem:[#allocation12 + $0x1a0] sm:$0xff]  ;;  %v2925_v43 = vpack.c.bf16 %v315_v37, %v307_v36  ;;  %v308_v46 = vld [vmem:[#allocation12 + $0x1b0] sm:$0xff] }
  0xb8   :  { %2908 = vmatpush1.bf16.msra.mxu0 %v2907_v55  ;;  %v2941_v44 = vpack.c.bf16 %v317_v39, %v309_v38  ;;  %v314_v45 = vld [vmem:[#allocation12 + $0x1e0] sm:$0xff]  ;;  %v316_v47 = vld [vmem:[#allocation12 + $0x1f0] sm:$0xff]  ;;  %v748_v53 = vld [vmem:[#allocation15] sm:$0xff] }
  0xb9   :  { %2910 = vmatprep.subr.bf16.mxu0 %v2909_v56  ;;  %v650_v48 = vld [vmem:[%s4195_s6] sm:$0xff]  ;;  %v651_v49 = vld [vmem:[%s4195_s6 + $0x8] sm:$0xff]  ;;  %v2927_v50 = vpack.c.bf16 %v314_v45, %v306_v42  ;;  %v2943_v51 = vpack.c.bf16 %v316_v47, %v308_v46  ;;  %v750_v58 = vld [vmem:[#allocation15 + $0x10] sm:$0xff] }
  0xba   :  { %v2945_v52 = vpack.c.bf16 %v651_v49, %v650_v48  ;;  %v749_v54 = vld [vmem:[#allocation15 + $0x8] sm:$0xff]  ;;  %v648_v55 = vld [vmem:[#allocation9] sm:$0xff]  ;;  %v649_v57 = vld [vmem:[#allocation9 + $0x8] sm:$0xff] }
  0xbb   :  { %v2950_v56 = vpack.c.bf16 %v749_v54, %v748_v53  ;;  %v747_v61 = vld [vmem:[#allocation2] sm:$0xff]  ;;  %v833_v22 = vld [vmem:[#allocation3] sm:$0xff] }
  0xbc   :  { %2912 = vmatpush1.bf16.msra.mxu0 %v2911_v59  ;;  %v751_v59 = vld [vmem:[#allocation15 + $0x18] sm:$0xff] }
  0xbd   :  { %2930 = vmatprep.subr.bf16.mxu0 %v2929_v3  ;;  %v2953_v60 = vpack.c.bf16 %v751_v59, %v750_v58  ;;  %v318_v7 = vld [vmem:[#allocation14] sm:$0xff]  ;;  %v1096_v58 = vld [vmem:[#allocation17 + $0x48] sm:$0xff] }
  0xbe   :  { %v1090_v59 = vld [vmem:[#allocation17 + $0x18] sm:$0xff] }
 0x182   :  { %v250_v13 = vpop.f32.mrb[0].mxu0 }
 0x183   :  { %v251_v18 = vadd.f32 %v2513_v4, %v250_v13  ;;  %v2842_v19 = vpop.f32.mrb[1].mxu0  ;;  %v320_v4 = vlaneseq  ;;  %v2519_v13 = vld [vmem:[%s4197_s8] ss:$0 sm:$0xff]  ;;  %s3775_s8 = smov 96  }
 0x185   :  { %2515 = vmatmul.mubr.msk.f32.vlgmr.msra.gmra.mrb[0].mxu1 %vm360_vm3, %v251_v18  ;;  %2516 = vmatmul.mubr.msk.f32.vlgmr.msra.gmra.mrb[2].mxu0 %vm360_vm3, %v251_v18  ;;  %v4047_v5 = vshrl.u32 %v320_v4, 7  ;;  %v1087_v4 = vld [vmem:[#allocation17] sm:$0xff] }
 0x186   :  { %2916 = vmatpush1.bf16.msra.mxu1 %v2915_v14  ;;  %2932 = vmatpush1.bf16.msra.mxu0 %v2931_v15 }
 0x187   :  { %2918 = vmatprep.subr.bf16.mxu1 %v2917_v20  ;;  %2934 = vmatprep.subr.bf16.mxu0 %v2933_v21  ;;  %v338_v6 = vsub.s32 4, %v4047_v5 }
 0x188   :  { %570 = vmatprep.mubr.f32.mxu1 %v3773_v1  ;;  %641 = vmatprep.mubr.f32.mxu0 %v3773_v1 }
 0x18a   :  { %2920 = vmatpush1.bf16.msra.mxu1 %v2919_v28  ;;  %2936 = vmatpush1.bf16.msra.mxu0 %v2935_v29 }
 0x18b   :  { %2922 = vmatprep.subr.bf16.mxu1 %v2921_v32  ;;  %2938 = vmatprep.subr.bf16.mxu0 %v2937_v33 }
 0x18e   :  { %2924 = vmatpush1.bf16.msra.mxu1 %v2923_v40  ;;  %2940 = vmatpush1.bf16.msra.mxu0 %v2939_v41 }
 0x18f   :  { %2926 = vmatprep.subr.bf16.mxu1 %v2925_v43  ;;  %2942 = vmatprep.subr.bf16.mxu0 %v2941_v44 }
 0x192   :  { %2928 = vmatpush1.bf16.msra.mxu1 %v2927_v50  ;;  %2944 = vmatpush1.bf16.msra.mxu0 %v2943_v51 }
 0x193   :  { %2946 = vmatprep.subr.bf16.mxu1 %v2945_v52  ;;  %2955 = vmatprep.subr.bf16.mxu0 %v3771_v0 }
 0x195   :  { %2517 = vmatmul.mubr.msk.f32.vlgmr.msra.gmra.mrb[2].mxu1 %vm360_vm3, %v251_v18  ;;  %2518 = vmatmul.mubr.msk.f32.vlgmr.msra.gmra.mrb[4].mxu0 %vm360_vm3, %v251_v18 }
 0x196   :  { %2948 = vmatpush3.bf16.msra.mxu1 %v2945_v52  ;;  %2847 = vmatprep.mubr.msk.f32.mxu1 %vm659_vm4, %v648_v55 }
 0x197   :  { %2949 = vmatprep.subr.bf16.mxu1 %v3771_v0  ;;  %2957 = vmatpush3.bf16.msra.mxu0 %v2950_v56 }
 0x198   :  { %2958 = vmatprep.subr.bf16.mxu0 %v3771_v0  ;;  %2869 = vmatprep.mubr.msk.f32.mxu0 %vm3772_vm0, %v3773_v1 }
 0x199   :  { %2848 = vmatmul.mubr.msk.f32.vlgmr.msra.gmra.mrb[4].mxu1 %vm659_vm4, %v649_v57  ;;  %v1088_v57 = vld [vmem:[#allocation17 + $0x8] sm:$0xff] }
 0x19a   :  { %2951 = vmatpush3.bf16.msra.mxu1 %v2950_v56  ;;  %2858 = vmatprep.mubr.msk.f32.mxu1 %vm3772_vm0, %v3773_v1 }
 0x19b   :  { %2952 = vmatprep.subr.bf16.mxu1 %v3771_v0  ;;  %2960 = vmatpush3.bf16.msra.mxu0 %v2953_v60  ;;  %v339_v0 = vrot.slane %v318_v7, %v338_v6  ;;  %v1095_v7 = vld [vmem:[#allocation17 + $0x40] sm:$0xff] }
 0x19e   :  { %2954 = vmatpush3.bf16.msra.mxu1 %v2953_v60  ;;  %v2961_v60 = vpack.c.bf16 %v1096_v58, %v1088_v57  ;;  %v1151_v58 = vld [vmem:[#allocation17 + $0x200] sm:$0xff] }
 0x1a0   :  { %2962 = vmatprep.subr.bf16.mxu1 %v2961_v60  ;;  %v1153_v60 = vld [vmem:[#allocation17 + $0x210] sm:$0xff] }
 0x1a1   :  { %2859 = vmatmul.mubr.msk.f32.vlgmr.msra.gmra.mrb[6].mxu1 %vm743_vm2, %v747_v61  ;;  %v1098_v61 = vld [vmem:[#allocation17 + $0x58] sm:$0xff] }
 0x258   :  { %v4039_v62 = vpop.f32.mrb[0].mxu1  ;;  %v4041_v63 = vpop.f32.mrb[2].mxu0 }
 0x259   :  { %v4043_v2 = vpop.f32.mrb[1].mxu1  ;;  %v4045_v3 = vpop.f32.mrb[3].mxu0 }
 0x268   :  { %v572_v8 = vpop.f32.mrb[2].mxu1  ;;  %v4052_v9 = vpop.f32.mrb[4].mxu0 }
 0x269   :  { %v4054_v10 = vadd.f32 %v572_v8, %v339_v0  ;;  %v4056_v11 = vpop.f32.mrb[3].mxu1  ;;  %v4058_v12 = vpop.f32.mrb[5].mxu0  ;;  %v3025_v0 = vpack.c.bf16 %v1098_v61, %v1090_v59  ;;  %v2963_v8 = vpack.c.bf16 %v1095_v7, %v1087_v4  ;;  %v1159_v59 = vld [vmem:[#allocation17 + $0x240] sm:$0xff]  ;;  %v1161_v4 = vld [vmem:[#allocation17 + $0x250] sm:$0xff]  ;;  %v1168_v7 = vld [vmem:[#allocation17 + $0x288] sm:$0xff] }
 0x26b   :  { %3026 = vmatprep.subr.bf16.mxu0 %v3025_v0  ;;  %2964 = vmatpush1.bf16.msra.mxu1 %v2963_v8  ;;  %v1176_v0 = vld [vmem:[#allocation17 + $0x2c8] sm:$0xff]  ;;  %v1170_v8 = vld [vmem:[#allocation17 + $0x298] sm:$0xff] }
 0x26c   :  { %v2849_v14 = vpop.f32.mrb[4].mxu1 }
 0x26d   :  { %v738_v15 = vadd.f32 %v2849_v14, %v2519_v13  ;;  %v732_v16 = vpop.f32.mrb[5].mxu1  ;;  %v1097_v14 = vld [vmem:[#allocation17 + $0x50] sm:$0xff] }
 0x26e   :  { %v733_v17 = vadd.f32 %v2519_v13, %v732_v16  ;;  %v1089_v13 = vld [vmem:[#allocation17 + $0x10] sm:$0xff] }
 0x26f   :  { %v3027_v16 = vpack.c.bf16 %v1097_v14, %v1089_v13  ;;  %v1178_v13 = vld [vmem:[#allocation17 + $0x2d8] sm:$0xff]  ;;  %v2979_v14 = vpack.c.bf16 %v1159_v59, %v1151_v58  ;;  %v1225_v58 = vld [vmem:[#allocation17 + $0x450] sm:$0xff]  ;;  %v1232_v59 = vld [vmem:[#allocation17 + $0x488] sm:$0xff] }
 0x274   :  { %v821_v18 = vpop.f32.mrb[6].mxu1 }
 0x275   :  { %v825_v19 = vadd.f32 %v821_v18, %v733_v17  ;;  %v2860_v20 = vpop.f32.mrb[7].mxu1  ;;  %v1112_v17 = vld [vmem:[#allocation17 + $0xc8] sm:$0xff]  ;;  %v1106_v18 = vld [vmem:[#allocation17 + $0x98] sm:$0xff] }
 0x277   :  { %3509 = vtanh.f32 %v825_v19  ;;  %v2523_v23 = vmul.f32 -1.442695, %v825_v19  ;;  %v1114_v19 = vld [vmem:[#allocation17 + $0xd8] sm:$0xff] }
 0x279   :  { %3511 = vpow2.f32 %v2523_v23  ;;  %v1111_v23 = vld [vmem:[#allocation17 + $0xc0] sm:$0xff] }
 0x281   :  { %v3510_v21 = vpop.eup %3509 }
 0x282   :  { %840 = vrot.lane.b32.xlu0 %v3510_v21, %s3763_s30  ;;  %v3029_v21 = vpack.c.bf16 %v1114_v19, %v1106_v18  ;;  %v1175_v18 = vld [vmem:[#allocation17 + $0x2c0] sm:$0xff]  ;;  %v1169_v19 = vld [vmem:[#allocation17 + $0x290] sm:$0xff] }
 0x283   :  { %v3512_v24 = vpop.eup %3511 }
 0x284   :  { %v829_v25 = vadd.f32 1.0, %v3512_v24  ;;  %v1105_v24 = vld [vmem:[#allocation17 + $0x90] sm:$0xff] }
 0x286   :  { %835 = vrot.lane.b32.xlu0 %v833_v22, %s3774_s17  ;;  %3513 = vrcp.f32 %v829_v25  ;;  %v1103_v22 = vld [vmem:[#allocation17 + $0x80] sm:$0xff] }
 0x287   :  { %v2967_v25 = vpack.c.bf16 %v1111_v23, %v1103_v22  ;;  %v1184_v22 = vld [vmem:[#allocation17 + $0x308] sm:$0xff] }
 0x288   :  { %v1192_v23 = vld [vmem:[#allocation17 + $0x348] sm:$0xff] }
 0x290   :  { %v3514_v26 = vpop.eup %3513 }
 0x2f4   :  { %v841_v27 = vpop.permute.xlu0 %840 }
 0x2f5   :  { %v843_v28 = vmul.f32 %v3514_v26, %v841_v27  ;;  %v1120_v27 = vld [vmem:[#allocation17 + $0x108] sm:$0xff] }
 0x2f7   :  { %845 = vrot.lane.b32.xlu1 %v843_v28, %s3774_s17  ;;  %v1128_v28 = vld [vmem:[#allocation17 + $0x148] sm:$0xff] }
 0x2f8   :  { %v836_v29 = vpop.permute.xlu0 %835 }
 0x2f9   :  { %v838_v30 = vmul.f32 %v3514_v26, %v836_v29 }
 0x369   :  { %v846_v31 = vpop.permute.xlu1 %845 }
 0x36a   :  { %v848_v32 = vadd.f32 %v846_v31, %v838_v30  ;;  %v2969_v30 = vpack.c.bf16 %v1128_v28, %v1120_v27  ;;  %v1122_v31 = vld [vmem:[#allocation17 + $0x118] sm:$0xff]  ;;  %v2985_v28 = vpack.c.bf16 %v1192_v23, %v1184_v22 }
 0x36c   :  { %3515 = vtanh.f32 %v848_v32 }
 0x376   :  { %v3516_v33 = vpop.eup %3515 }
 0x377   :  { %851 = vrot.lane.b32.xlu1 %v3516_v33, %s3763_s30  ;;  %v1119_v33 = vld [vmem:[#allocation17 + $0x100] sm:$0xff] }
 0x37b   :  { %856 = vrot.lane.b32.xlu1 %v848_v32, %s3775_s8  ;;  %v1130_v32 = vld [vmem:[#allocation17 + $0x158] sm:$0xff] }
 0x3e9   :  { %v852_v34 = vpop.permute.xlu1 %851 }
 0x3ea   :  { %v854_v35 = vmul.f32 %v3514_v26, %v852_v34  ;;  %v1113_v26 = vld [vmem:[#allocation17 + $0xd0] sm:$0xff]  ;;  %v3033_v34 = vpack.c.bf16 %v1130_v32, %v1122_v31 }
 0x3eb   :  { %v3031_v29 = vpack.c.bf16 %v1113_v26, %v1105_v24  ;;  %v1186_v24 = vld [vmem:[#allocation17 + $0x318] sm:$0xff]  ;;  %v1185_v31 = vld [vmem:[#allocation17 + $0x310] sm:$0xff] }
 0x3ec   :  { %861 = vrot.lane.b32.xlu0 %v854_v35, %s3774_s17  ;;  %v1127_v35 = vld [vmem:[#allocation17 + $0x140] sm:$0xff] }
 0x3ed   :  { %v857_v36 = vpop.permute.xlu1 %856 }
 0x3ee   :  { %859 = vst.msk [vmem:[#allocation3] sm:$0xff] %vm743_vm2, %v857_v36  ;;  %v1121_v36 = vld [vmem:[#allocation17 + $0x110] sm:$0xff] }
 0x3f5   :  { %v954_v37 = vld [vmem:[#allocation3] sm:$0xff] }
 0x3f6   :  { %956 = vrot.lane.b32.xlu1 %v954_v37, %s3774_s17  ;;  %v1129_v37 = vld [vmem:[#allocation17 + $0x150] sm:$0xff] }
 0x45e   :  { %v862_v38 = vpop.permute.xlu0 %861 }
 0x45f   :  { %864 = vst.msk [vmem:[#allocation2] sm:$0xff] %vm743_vm2, %v862_v38  ;;  %865 = vst.msk [vmem:[#allocation5] sm:$0xff] %vm743_vm2, %v862_v38  ;;  %v2971_v38 = vpack.c.bf16 %v1127_v35, %v1119_v33  ;;  %v1193_v33 = vld [vmem:[#allocation17 + $0x350] sm:$0xff]  ;;  %v1208_v35 = vld [vmem:[#allocation17 + $0x3c8] sm:$0xff] }
 0x466   :  { %v868_v39 = vld [vmem:[#allocation2] sm:$0xff] }
 0x467   :  { %2870 = vmatmul.mubr.msk.f32.vlgmr.msra.gmra.mrb[6].mxu0 %vm743_vm2, %v868_v39  ;;  %v1136_v39 = vld [vmem:[#allocation17 + $0x188] sm:$0xff] }
 0x468   :  { %v957_v50 = vpop.permute.xlu1 %956  ;;  %3028 = vmatpush1.bf16.msra.mxu0 %v3027_v16  ;;  %v2981_v16 = vpack.c.bf16 %v1176_v0, %v1168_v7 }
 0x469   :  { %3030 = vmatprep.subr.bf16.mxu0 %v3029_v21  ;;  %v1177_v21 = vld [vmem:[#allocation17 + $0x2d0] sm:$0xff] }
 0x46a   :  { %v3047_v27 = vpack.c.bf16 %v1177_v21, %v1169_v19  ;;  %v1256_v19 = vld [vmem:[#allocation17 + $0x548] sm:$0xff]  ;;  %v1258_v21 = vld [vmem:[#allocation17 + $0x558] sm:$0xff] }
 0x46c   :  { %3032 = vmatpush1.bf16.msra.mxu0 %v3031_v29  ;;  %v1183_v29 = vld [vmem:[#allocation17 + $0x300] sm:$0xff] }
 0x46d   :  { %3034 = vmatprep.subr.bf16.mxu0 %v3033_v34  ;;  %v1200_v34 = vld [vmem:[#allocation17 + $0x388] sm:$0xff] }
 0x53a   :  { %v942_v40 = vpop.f32.mrb[6].mxu0 }
 0x53b   :  { %v946_v41 = vadd.f32 %v942_v40, %v738_v15  ;;  %v2871_v42 = vpop.f32.mrb[7].mxu0  ;;  %v1104_v15 = vld [vmem:[#allocation17 + $0x88] sm:$0xff] }
 0x53c   :  { %v2965_v20 = vpack.c.bf16 %v1112_v17, %v1104_v15  ;;  %v1144_v40 = vld [vmem:[#allocation17 + $0x1c8] sm:$0xff]  ;;  %v3035_v42 = vpack.c.bf16 %v1129_v37, %v1121_v36  ;;  %v3043_v15 = vpack.c.bf16 %v1161_v4, %v1153_v60  ;;  %v1167_v17 = vld [vmem:[#allocation17 + $0x280] sm:$0xff]  ;;  %v1202_v36 = vld [vmem:[#allocation17 + $0x398] sm:$0xff] }
 0x53d   :  { %3517 = vtanh.f32 %v946_v41  ;;  %v2525_v44 = vmul.f32 -1.442695, %v946_v41  ;;  %v1138_v41 = vld [vmem:[#allocation17 + $0x198] sm:$0xff]  ;;  %v2983_v26 = vpack.c.bf16 %v1175_v18, %v1167_v17  ;;  %v1240_v60 = vld [vmem:[#allocation17 + $0x4c8] sm:$0xff]  ;;  %v1241_v17 = vld [vmem:[#allocation17 + $0x4d0] sm:$0xff] }
 0x53e   :  { %2966 = vmatprep.subr.bf16.mxu1 %v2965_v20  ;;  %3036 = vmatpush1.bf16.msra.mxu0 %v3035_v42  ;;  %v3045_v20 = vpack.c.bf16 %v1178_v13, %v1170_v8  ;;  %v1210_v37 = vld [vmem:[#allocation17 + $0x3d8] sm:$0xff]  ;;  %v1207_v42 = vld [vmem:[#allocation17 + $0x3c0] sm:$0xff]  ;;  %v2997_v8 = vpack.c.bf16 %v1240_v60, %v1232_v59  ;;  %v1248_v18 = vld [vmem:[#allocation17 + $0x508] sm:$0xff] }
 0x53f   :  { %3519 = vpow2.f32 %v2525_v44  ;;  %2968 = vmatpush1.bf16.msra.mxu1 %v2967_v25  ;;  %v1146_v44 = vld [vmem:[#allocation17 + $0x1d8] sm:$0xff]  ;;  %v1231_v13 = vld [vmem:[#allocation17 + $0x480] sm:$0xff] }
 0x540   :  { %2970 = vmatprep.subr.bf16.mxu1 %v2969_v30  ;;  %v1194_v25 = vld [vmem:[#allocation17 + $0x358] sm:$0xff]  ;;  %v1191_v30 = vld [vmem:[#allocation17 + $0x340] sm:$0xff] }
 0x541   :  { %v3049_v32 = vpack.c.bf16 %v1194_v25, %v1186_v24  ;;  %v1242_v4 = vld [vmem:[#allocation17 + $0x4d8] sm:$0xff]  ;;  %v3001_v24 = vpack.c.bf16 %v1256_v19, %v1248_v18  ;;  %v1247_v25 = vld [vmem:[#allocation17 + $0x500] sm:$0xff] }
 0x543   :  { %2972 = vmatpush1.bf16.msra.mxu1 %v2971_v38  ;;  %v2987_v38 = vpack.c.bf16 %v1191_v30, %v1183_v29  ;;  %v1257_v29 = vld [vmem:[#allocation17 + $0x550] sm:$0xff]  ;;  %v1264_v30 = vld [vmem:[#allocation17 + $0x588] sm:$0xff] }
 0x547   :  { %v3518_v43 = vpop.eup %3517 }
 0x548   :  { %961 = vrot.lane.b32.xlu0 %v3518_v43, %s3763_s30  ;;  %v2973_v43 = vpack.c.bf16 %v1144_v40, %v1136_v39  ;;  %v3051_v39 = vpack.c.bf16 %v1193_v33, %v1185_v31  ;;  %v2989_v40 = vpack.c.bf16 %v1208_v35, %v1200_v34  ;;  %v1272_v31 = vld [vmem:[#allocation17 + $0x5c8] sm:$0xff]  ;;  %v1274_v33 = vld [vmem:[#allocation17 + $0x5d8] sm:$0xff] }
 0x549   :  { %v3520_v45 = vpop.eup %3519 }
 0x54a   :  { %v950_v46 = vadd.f32 1.0, %v3520_v45  ;;  %v1135_v45 = vld [vmem:[#allocation17 + $0x180] sm:$0xff]  ;;  %2974 = vmatprep.subr.bf16.mxu1 %v2973_v43  ;;  %v1201_v43 = vld [vmem:[#allocation17 + $0x390] sm:$0xff] }
 0x54c   :  { %3521 = vrcp.f32 %v950_v46  ;;  %v1143_v46 = vld [vmem:[#allocation17 + $0x1c0] sm:$0xff] }
 0x556   :  { %v3522_v47 = vpop.eup %3521 }
 0x557   :  { %v959_v51 = vmul.f32 %v3522_v47, %v957_v50  ;;  %v1152_v50 = vld [vmem:[#allocation17 + $0x208] sm:$0xff] }
 0x5ba   :  { %v962_v48 = vpop.permute.xlu0 %961 }
 0x5bb   :  { %v964_v49 = vmul.f32 %v3522_v47, %v962_v48  ;;  %v1137_v48 = vld [vmem:[#allocation17 + $0x190] sm:$0xff] }
 0x5bd   :  { %966 = vrot.lane.b32.xlu0 %v964_v49, %s3774_s17  ;;  %v1145_v49 = vld [vmem:[#allocation17 + $0x1d0] sm:$0xff] }
 0x62f   :  { %v967_v52 = vpop.permute.xlu0 %966 }
 0x630   :  { %v4076_v53 = vadd.f32 %v967_v52, %v959_v51  ;;  %v1160_v51 = vld [vmem:[#allocation17 + $0x248] sm:$0xff]  ;;  %v1154_v52 = vld [vmem:[#allocation17 + $0x218] sm:$0xff] }
 0x631   :  { %v2977_v57 = vpack.c.bf16 %v1160_v51, %v1152_v50 }
 0x632   :  { %3523 = vtanh.f32 %v4076_v53 }
 0x63c   :  { %v3524_v54 = vpop.eup %3523 }
 0x63d   :  { %972 = vrot.lane.b32.xlu1 %v3524_v54, %s3763_s30  ;;  %v1162_v54 = vld [vmem:[#allocation17 + $0x258] sm:$0xff] }
 0x63e   :  { %v3041_v61 = vpack.c.bf16 %v1162_v54, %v1154_v52  ;;  %v1215_v54 = vld [vmem:[#allocation17 + $0x400] sm:$0xff] }
 0x6af   :  { %v973_v55 = vpop.permute.xlu1 %972 }
 0x6b0   :  { %v975_v56 = vmul.f32 %v3522_v47, %v973_v55  ;;  %v3037_v47 = vpack.c.bf16 %v1146_v44, %v1138_v41  ;;  %v2975_v55 = vpack.c.bf16 %v1143_v46, %v1135_v45  ;;  %v1199_v41 = vld [vmem:[#allocation17 + $0x380] sm:$0xff]  ;;  %v3053_v44 = vpack.c.bf16 %v1210_v37, %v1202_v36  ;;  %v1209_v45 = vld [vmem:[#allocation17 + $0x3d0] sm:$0xff]  ;;  %v1216_v46 = vld [vmem:[#allocation17 + $0x408] sm:$0xff] }
 0x6b1   :  { %v2991_v50 = vpack.c.bf16 %v1207_v42, %v1199_v41  ;;  %v3055_v51 = vpack.c.bf16 %v1209_v45, %v1201_v43  ;;  %v3005_v36 = vpack.c.bf16 %v1272_v31, %v1264_v30  ;;  %v1263_v37 = vld [vmem:[#allocation17 + $0x580] sm:$0xff]  ;;  %v1273_v41 = vld [vmem:[#allocation17 + $0x5d0] sm:$0xff]  ;;  %v1280_v42 = vld [vmem:[#allocation17 + $0x608] sm:$0xff] }
 0x6b2   :  { %982 = vrot.lane.b32.xlu0 %v975_v56, %s3774_s17  ;;  %v3039_v56 = vpack.c.bf16 %v1145_v49, %v1137_v48  ;;  %3038 = vmatprep.subr.bf16.mxu0 %v3037_v47  ;;  %v1224_v47 = vld [vmem:[#allocation17 + $0x448] sm:$0xff]  ;;  %v1218_v48 = vld [vmem:[#allocation17 + $0x418] sm:$0xff]  ;;  %v1311_v30 = vld [vmem:[#allocation17 + $0x700] sm:$0xff] }
 0x6b3   :  { %2976 = vmatpush1.bf16.msra.mxu1 %v2975_v55  ;;  %v1226_v49 = vld [vmem:[#allocation17 + $0x458] sm:$0xff]  ;;  %v2993_v52 = vpack.c.bf16 %v1224_v47, %v1216_v46  ;;  %v1223_v55 = vld [vmem:[#allocation17 + $0x440] sm:$0xff]  ;;  %v1288_v43 = vld [vmem:[#allocation17 + $0x648] sm:$0xff] }
 0x6b4   :  { %3040 = vmatpush1.bf16.msra.mxu0 %v3039_v56  ;;  %2978 = vmatprep.subr.bf16.mxu1 %v2977_v57  ;;  %v1217_v56 = vld [vmem:[#allocation17 + $0x410] sm:$0xff]  ;;  %v3057_v57 = vpack.c.bf16 %v1226_v49, %v1218_v48  ;;  %v2995_v7 = vpack.c.bf16 %v1223_v55, %v1215_v54  ;;  %v1290_v45 = vld [vmem:[#allocation17 + $0x658] sm:$0xff]  ;;  %v3009_v48 = vpack.c.bf16 %v1288_v43, %v1280_v42  ;;  %v1279_v49 = vld [vmem:[#allocation17 + $0x600] sm:$0xff] }
 0x6b5   :  { %3042 = vmatprep.subr.bf16.mxu0 %v3041_v61  ;;  %v1234_v61 = vld [vmem:[#allocation17 + $0x498] sm:$0xff]  ;;  %v3059_v0 = vpack.c.bf16 %v1225_v58, %v1217_v56  ;;  %v1289_v54 = vld [vmem:[#allocation17 + $0x650] sm:$0xff]  ;;  %v1296_v55 = vld [vmem:[#allocation17 + $0x688] sm:$0xff] }
 0x6b6   :  { %v1304_v56 = vld [vmem:[#allocation17 + $0x6c8] sm:$0xff]  ;;  %v1306_v58 = vld [vmem:[#allocation17 + $0x6d8] sm:$0xff]  ;;  %v1319_v31 = vld [vmem:[#allocation17 + $0x740] sm:$0xff] }
 0x6b7   :  { %2980 = vmatpush1.bf16.msra.mxu1 %v2979_v14  ;;  %v1239_v14 = vld [vmem:[#allocation17 + $0x4c0] sm:$0xff] }
 0x6b8   :  { %3044 = vmatpush1.bf16.msra.mxu0 %v3043_v15  ;;  %2982 = vmatprep.subr.bf16.mxu1 %v2981_v16  ;;  %v1233_v15 = vld [vmem:[#allocation17 + $0x490] sm:$0xff]  ;;  %v3061_v16 = vpack.c.bf16 %v1242_v4, %v1234_v61  ;;  %v2999_v22 = vpack.c.bf16 %v1239_v14, %v1231_v13  ;;  %v3013_v61 = vpack.c.bf16 %v1304_v56, %v1296_v55  ;;  %v1295_v4 = vld [vmem:[#allocation17 + $0x680] sm:$0xff] }
 0x6b9   :  { %3046 = vmatprep.subr.bf16.mxu0 %v3045_v20  ;;  %v1250_v20 = vld [vmem:[#allocation17 + $0x518] sm:$0xff]  ;;  %v3063_v23 = vpack.c.bf16 %v1241_v17, %v1233_v15  ;;  %v1305_v13 = vld [vmem:[#allocation17 + $0x6d0] sm:$0xff] }
 0x6bb   :  { %2984 = vmatpush1.bf16.msra.mxu1 %v2983_v26  ;;  %v1255_v26 = vld [vmem:[#allocation17 + $0x540] sm:$0xff] }
 0x6bc   :  { %3048 = vmatpush1.bf16.msra.mxu0 %v3047_v27  ;;  %2986 = vmatprep.subr.bf16.mxu1 %v2985_v28  ;;  %v1249_v27 = vld [vmem:[#allocation17 + $0x510] sm:$0xff]  ;;  %v3065_v28 = vpack.c.bf16 %v1258_v21, %v1250_v20  ;;  %v3003_v34 = vpack.c.bf16 %v1255_v26, %v1247_v25  ;;  %v3777_v20 = vmov 1934713408   ;;  %v1320_v25 = vld [vmem:[#allocation17 + $0x748] sm:$0xff]  ;;  %v1314_v26 = vld [vmem:[#allocation17 + $0x718] sm:$0xff] }
 0x6bd   :  { %3050 = vmatprep.subr.bf16.mxu0 %v3049_v32  ;;  %v1266_v32 = vld [vmem:[#allocation17 + $0x598] sm:$0xff]  ;;  %v3067_v35 = vpack.c.bf16 %v1257_v29, %v1249_v27  ;;  %v1023_v21 = vunpack.c.l.s4 %v3777_v20 }
 0x6be   :  { %v1322_v29 = vld [vmem:[#allocation17 + $0x758] sm:$0xff] }
 0x6bf   :  { %2988 = vmatpush1.bf16.msra.mxu1 %v2987_v38  ;;  %v1271_v38 = vld [vmem:[#allocation17 + $0x5c0] sm:$0xff]  ;;  %v1024_v27 = vunpack.c.0.s8 %v1023_v21 }
 0x6c0   :  { %3052 = vmatpush1.bf16.msra.mxu0 %v3051_v39  ;;  %2990 = vmatprep.subr.bf16.mxu1 %v2989_v40  ;;  %v1265_v39 = vld [vmem:[#allocation17 + $0x590] sm:$0xff]  ;;  %v3069_v40 = vpack.c.bf16 %v1274_v33, %v1266_v32  ;;  %v3007_v46 = vpack.c.bf16 %v1271_v38, %v1263_v37  ;;  %v3081_v33 = vpack.c.bf16 %v1322_v29, %v1314_v26 }
 0x6c1   :  { %3054 = vmatprep.subr.bf16.mxu0 %v3053_v44  ;;  %v1282_v44 = vld [vmem:[#allocation17 + $0x618] sm:$0xff]  ;;  %v3071_v47 = vpack.c.bf16 %v1273_v41, %v1265_v39  ;;  %v1336_v41 = vld [vmem:[#allocation17 + $0x7c8] sm:$0xff] }
 0x6c3   :  { %2992 = vmatpush1.bf16.msra.mxu1 %v2991_v50  ;;  %v1287_v50 = vld [vmem:[#allocation17 + $0x640] sm:$0xff] }
 0x6c4   :  { %3056 = vmatpush1.bf16.msra.mxu0 %v3055_v51  ;;  %2994 = vmatprep.subr.bf16.mxu1 %v2993_v52  ;;  %v1281_v51 = vld [vmem:[#allocation17 + $0x610] sm:$0xff]  ;;  %v3073_v52 = vpack.c.bf16 %v1290_v45, %v1282_v44  ;;  %v3011_v59 = vpack.c.bf16 %v1287_v50, %v1279_v49  ;;  %v1027_v44 = vsub.s32 %v1024_v27, %v4047_v5 }
 0x6c5   :  { %3058 = vmatprep.subr.bf16.mxu0 %v3057_v57  ;;  %v1298_v57 = vld [vmem:[#allocation17 + $0x698] sm:$0xff]  ;;  %v3075_v60 = vpack.c.bf16 %v1289_v54, %v1281_v51  ;;  %v1335_v51 = vld [vmem:[#allocation17 + $0x7c0] sm:$0xff]  ;;  %v1337_v54 = vld [vmem:[#allocation17 + $0x7d0] sm:$0xff] }
 0x6c7   :  { %2996 = vmatpush1.bf16.msra.mxu1 %v2995_v7  ;;  %v1303_v7 = vld [vmem:[#allocation17 + $0x6c0] sm:$0xff] }
 0x6c8   :  { %3060 = vmatpush1.bf16.msra.mxu0 %v3059_v0  ;;  %2998 = vmatprep.subr.bf16.mxu1 %v2997_v8  ;;  %v3077_v0 = vpack.c.bf16 %v1306_v58, %v1298_v57  ;;  %v1297_v8 = vld [vmem:[#allocation17 + $0x690] sm:$0xff]  ;;  %v3015_v14 = vpack.c.bf16 %v1303_v7, %v1295_v4  ;;  %v1094_v4 = vld [vmem:[#allocation17 + $0x38] sm:$0xff] }
 0x6c9   :  { %3062 = vmatprep.subr.bf16.mxu0 %v3061_v16  ;;  %v3079_v15 = vpack.c.bf16 %v1305_v13, %v1297_v8  ;;  %v3776_v16 = vmov 1983009808   ;;  %v1102_v13 = vld [vmem:[#allocation17 + $0x78] sm:$0xff] }
 0x6ca   :  { %v992_v17 = vunpack.c.l.s4 %v3776_v16 }
 0x6cb   :  { %3000 = vmatpush1.bf16.msra.mxu1 %v2999_v22  ;;  %v988_v22 = vld [vmem:[#allocation5] sm:$0xff] }
 0x6cc   :  { %3064 = vmatpush1.bf16.msra.mxu0 %v3063_v23  ;;  %3002 = vmatprep.subr.bf16.mxu1 %v3001_v24  ;;  %v993_v19 = vunpack.c.0.s8 %v992_v17  ;;  %v1312_v24 = vld [vmem:[#allocation17 + $0x708] sm:$0xff]  ;;  %v990_v32 = vcombine.high %v988_v22, %v3773_v1 }
 0x6cd   :  { %3066 = vmatprep.subr.bf16.mxu0 %v3065_v28  ;;  %v3017_v28 = vpack.c.bf16 %v1320_v25, %v1312_v24 }
 0x6ce   :  { %v996_v23 = vsub.s32 %v993_v19, %v4047_v5 }
 0x6cf   :  { %3004 = vmatpush1.bf16.msra.mxu1 %v3003_v34  ;;  %v3019_v34 = vpack.c.bf16 %v1319_v31, %v1311_v30  ;;  %v1091_v31 = vld [vmem:[#allocation17 + $0x20] sm:$0xff] }
 0x6d0   :  { %3068 = vmatpush1.bf16.msra.mxu0 %v3067_v35  ;;  %3006 = vmatprep.subr.bf16.mxu1 %v3005_v36  ;;  %v1313_v35 = vld [vmem:[#allocation17 + $0x710] sm:$0xff]  ;;  %v997_v39 = vrot.slane %v988_v22, %v996_v23  ;;  %v1004_v49 = vrot.slane %v990_v32, %v996_v23 }
 0x6d1   :  { %3070 = vmatprep.subr.bf16.mxu0 %v3069_v40  ;;  %v1321_v36 = vld [vmem:[#allocation17 + $0x750] sm:$0xff]  ;;  %v1328_v40 = vld [vmem:[#allocation17 + $0x788] sm:$0xff] }
 0x6d2   :  { %v3083_v37 = vpack.c.bf16 %v1321_v36, %v1313_v35  ;;  %v3021_v45 = vpack.c.bf16 %v1336_v41, %v1328_v40  ;;  %v1101_v35 = vld [vmem:[#allocation17 + $0x70] sm:$0xff]  ;;  %v1116_v41 = vld [vmem:[#allocation17 + $0xe8] sm:$0xff] }
 0x6d3   :  { %3008 = vmatpush1.bf16.msra.mxu1 %v3007_v46  ;;  %v1330_v46 = vld [vmem:[#allocation17 + $0x798] sm:$0xff] }
 0x6d4   :  { %3072 = vmatpush1.bf16.msra.mxu0 %v3071_v47  ;;  %3010 = vmatprep.subr.bf16.mxu1 %v3009_v48  ;;  %v1338_v47 = vld [vmem:[#allocation17 + $0x7d8] sm:$0xff]  ;;  %v1327_v48 = vld [vmem:[#allocation17 + $0x780] sm:$0xff] }
 0x6d5   :  { %3074 = vmatprep.subr.bf16.mxu0 %v3073_v52  ;;  %v3085_v50 = vpack.c.bf16 %v1338_v47, %v1330_v46  ;;  %v1329_v52 = vld [vmem:[#allocation17 + $0x790] sm:$0xff]  ;;  %v3023_v58 = vpack.c.bf16 %v1335_v51, %v1327_v48  ;;  %v1107_v48 = vld [vmem:[#allocation17 + $0xa0] sm:$0xff] }
 0x6d7   :  { %3012 = vmatpush1.bf16.msra.mxu1 %v3011_v59  ;;  %v3087_v59 = vpack.c.bf16 %v1337_v54, %v1329_v52  ;;  %v1109_v52 = vld [vmem:[#allocation17 + $0xb0] sm:$0xff] }
 0x6d8   :  { %3076 = vmatpush1.bf16.msra.mxu0 %v3075_v60  ;;  %3014 = vmatprep.subr.bf16.mxu1 %v3013_v61  ;;  %v1092_v60 = vld [vmem:[#allocation17 + $0x28] sm:$0xff]  ;;  %v1117_v54 = vld [vmem:[#allocation17 + $0xf0] sm:$0xff] }
 0x6d9   :  { %3078 = vmatprep.subr.bf16.mxu0 %v3077_v0  ;;  %v1100_v61 = vld [vmem:[#allocation17 + $0x68] sm:$0xff] }
 0x6db   :  { %3016 = vmatpush1.bf16.msra.mxu1 %v3015_v14  ;;  %v3089_v14 = vpack.c.bf16 %v1100_v61, %v1092_v60  ;;  %v1134_v60 = vld [vmem:[#allocation17 + $0x178] sm:$0xff] }
 0x6dc   :  { %3080 = vmatpush1.bf16.msra.mxu0 %v3079_v15  ;;  %3018 = vmatprep.subr.bf16.mxu1 %v3017_v28  ;;  %v3153_v15 = vpack.c.bf16 %v1102_v13, %v1094_v4  ;;  %v3159_v4 = vpack.c.bf16 %v1117_v54, %v1109_v52  ;;  %v1196_v52 = vld [vmem:[#allocation17 + $0x368] sm:$0xff]  ;;  %v1190_v54 = vld [vmem:[#allocation17 + $0x338] sm:$0xff] }
 0x6dd   :  { %3082 = vmatprep.subr.bf16.mxu0 %v3081_v33 }
 0x6df   :  { %3020 = vmatpush1.bf16.msra.mxu1 %v3019_v34  ;;  %v1093_v34 = vld [vmem:[#allocation17 + $0x30] sm:$0xff] }
 0x6e0   :  { %3084 = vmatpush1.bf16.msra.mxu0 %v3083_v37  ;;  %3022 = vmatprep.subr.bf16.mxu1 %v3021_v45  ;;  %v3155_v47 = vpack.c.bf16 %v1101_v35, %v1093_v34  ;;  %v1163_v34 = vld [vmem:[#allocation17 + $0x260] sm:$0xff] }
 0x6e1   :  { %3086 = vmatprep.subr.bf16.mxu0 %v3085_v50 }
 0x6e3   :  { %3024 = vmatpush1.bf16.msra.mxu1 %v3023_v58  ;;  %v1132_v58 = vld [vmem:[#allocation17 + $0x168] sm:$0xff] }
 0x6e4   :  { %3088 = vmatpush1.bf16.msra.mxu0 %v3087_v59  ;;  %3090 = vmatprep.subr.bf16.mxu1 %v3089_v14  ;;  %v1126_v59 = vld [vmem:[#allocation17 + $0x138] sm:$0xff]  ;;  %v1125_v14 = vld [vmem:[#allocation17 + $0x130] sm:$0xff] }
 0x6e5   :  { %3154 = vmatprep.subr.bf16.mxu0 %v3153_v15  ;;  %v3161_v13 = vpack.c.bf16 %v1134_v60, %v1126_v59  ;;  %v1133_v15 = vld [vmem:[#allocation17 + $0x170] sm:$0xff]  ;;  %v1195_v59 = vld [vmem:[#allocation17 + $0x360] sm:$0xff] }
 0x724   :  { %v983_v18 = vpop.permute.xlu0 %982 }
 0x725   :  { %985 = vst.msk [vmem:[#allocation2] sm:$0xff] %vm743_vm2, %v983_v18  ;;  %987 = vst.msk [vmem:[#allocation5 + $0x8] sm:$0xff] %vm743_vm2, %v983_v18 }
 0x72c   :  { %v989_v38 = vld [vmem:[#allocation5 + $0x8] sm:$0xff] }
 0x72d   :  { %v1005_v42 = vcombine.high %v989_v38, %v3773_v1  ;;  %v1012_v43 = vrot.slane %v989_v38, %v996_v23  ;;  %v1108_v38 = vld [vmem:[#allocation17 + $0xa8] sm:$0xff] }
 0x72f   :  { %v1019_v55 = vrot.slane %v1005_v42, %v996_v23  ;;  %v1020_v56 = vcombine.low %v997_v39, %v1012_v43  ;;  %v1021_v57 = vcombine.high %v997_v39, %v1012_v43  ;;  %v1110_v42 = vld [vmem:[#allocation17 + $0xb8] sm:$0xff] }
 0x730   :  { %v1118_v43 = vld [vmem:[#allocation17 + $0xf8] sm:$0xff] }
 0x731   :  { %v1037_v7 = vcombine.high %v1004_v49, %v1019_v55  ;;  %v1036_v0 = vcombine.low %v1004_v49, %v1019_v55  ;;  %v1028_v8 = vrot.slane %v1020_v56, %v1027_v44  ;;  %v1035_v16 = vrot.slane %v1021_v57, %v1027_v44  ;;  %v1115_v49 = vld [vmem:[#allocation17 + $0xe0] sm:$0xff]  ;;  %v1124_v55 = vld [vmem:[#allocation17 + $0x128] sm:$0xff] }
 0x732   :  { %v3093_v56 = vpack.c.bf16 %v1116_v41, %v1108_v38  ;;  %v3157_v57 = vpack.c.bf16 %v1118_v43, %v1110_v42  ;;  %v3095_v61 = vpack.c.bf16 %v1115_v49, %v1107_v48  ;;  %v1172_v38 = vld [vmem:[#allocation17 + $0x2a8] sm:$0xff]  ;;  %v1182_v41 = vld [vmem:[#allocation17 + $0x2f8] sm:$0xff]  ;;  %v1173_v48 = vld [vmem:[#allocation17 + $0x2b0] sm:$0xff] }
 0x733   :  { %v1051_v17 = vrot.slane %v1037_v7, %v1027_v44  ;;  %v1044_v18 = vrot.slane %v1036_v0, %v1027_v44  ;;  %v1052_v20 = vcombine.high %v1028_v8, %v3773_v1  ;;  %v1053_v24 = vcombine.high %v1035_v16, %v3773_v1  ;;  %v1123_v7 = vld [vmem:[#allocation17 + $0x120] sm:$0xff]  ;;  %v1181_v49 = vld [vmem:[#allocation17 + $0x2f0] sm:$0xff] }
 0x734   :  { %v1131_v0 = vld [vmem:[#allocation17 + $0x160] sm:$0xff] }
 0x735   :  { %v3494_v19 = vpack.i.bf16 %v1035_v16, %v1051_v17  ;;  %v1054_v21 = vcombine.high %v1044_v18, %v3773_v1  ;;  %v1055_v22 = vcombine.high %v1051_v17, %v3773_v1  ;;  %v1099_v1 = vld [vmem:[#allocation17 + $0x60] sm:$0xff]  ;;  %v1140_v16 = vld [vmem:[#allocation17 + $0x1a8] sm:$0xff] }
 0x736   :  { %v3091_v46 = vpack.c.bf16 %v1099_v1, %v1091_v31  ;;  %v1148_v17 = vld [vmem:[#allocation17 + $0x1e8] sm:$0xff]  ;;  %v1166_v31 = vld [vmem:[#allocation17 + $0x278] sm:$0xff]  ;;  %v1155_v1 = vld [vmem:[#allocation17 + $0x220] sm:$0xff] }
 0x737   :  { %3495 = vrot.lane.b32.xlu0 %v3494_v19, %s3763_s30  ;;  %v3499_v23 = vpack.i.bf16 %v1052_v20, %v1054_v21  ;;  %v3504_v25 = vpack.i.bf16 %v1053_v24, %v1055_v22  ;;  %v1150_v19 = vld [vmem:[#allocation17 + $0x1f8] sm:$0xff]  ;;  %v3099_v20 = vpack.c.bf16 %v1131_v0, %v1123_v7  ;;  %v3163_v21 = vpack.c.bf16 %v1133_v15, %v1125_v14  ;;  %v1139_v22 = vld [vmem:[#allocation17 + $0x1a0] sm:$0xff]  ;;  %v1197_v7 = vld [vmem:[#allocation17 + $0x370] sm:$0xff] }
 0x738   :  { %v3101_v24 = vpack.c.bf16 %v1148_v17, %v1140_v16  ;;  %v3107_v42 = vpack.c.bf16 %v1163_v34, %v1155_v1  ;;  %v1204_v0 = vld [vmem:[#allocation17 + $0x3a8] sm:$0xff]  ;;  %v1214_v14 = vld [vmem:[#allocation17 + $0x3f8] sm:$0xff]  ;;  %v1203_v17 = vld [vmem:[#allocation17 + $0x3a0] sm:$0xff] }
 0x739   :  { %3500 = vrot.lane.b32.xlu1 %v3499_v23, %s3774_s17  ;;  %v1147_v23 = vld [vmem:[#allocation17 + $0x1e0] sm:$0xff]  ;;  %v1229_v1 = vld [vmem:[#allocation17 + $0x470] sm:$0xff]  ;;  %v1236_v34 = vld [vmem:[#allocation17 + $0x4a8] sm:$0xff] }
 0x73b   :  { %977 = vrot.lane.b32.xlu0 %v4076_v53, %s3775_s8 }
 0x73d   :  { %3505 = vrot.lane.b32.xlu1 %v3504_v25, %s3775_s8 }
 0x7a9   :  { %v3496_v26 = vpop.permute.xlu0 %3495 }
 0x7aa   :  { %v3498_v36 = vunpack.i.h.bf16 %v3496_v26  ;;  %v3497_v53 = vunpack.i.l.bf16 %v3496_v26  ;;  %v1141_v26 = vld [vmem:[#allocation17 + $0x1b0] sm:$0xff] }
 0x7ab   :  { %v3501_v27 = vpop.permute.xlu1 %3500 }
 0x7ac   :  { %v3503_v28 = vunpack.i.h.bf16 %v3501_v27  ;;  %v3502_v29 = vunpack.i.l.bf16 %v3501_v27  ;;  %v1149_v27 = vld [vmem:[#allocation17 + $0x1f0] sm:$0xff] }
 0x7ad   :  { %v978_v30 = vpop.permute.xlu0 %977 }
 0x7ae   :  { %v1080_v32 = vsel %vm743_vm2, %v1028_v8, %v3503_v28  ;;  %v1084_v33 = vsel %vm743_vm2, %v1044_v18, %v3502_v29  ;;  %980 = vst.msk [vmem:[#allocation3] sm:$0xff] %vm743_vm2, %v978_v30  ;;  %v3097_v8 = vpack.c.bf16 %v1132_v58, %v1124_v55  ;;  %v1142_v18 = vld [vmem:[#allocation17 + $0x1b8] sm:$0xff]  ;;  %v1156_v28 = vld [vmem:[#allocation17 + $0x228] sm:$0xff]  ;;  %v1187_v58 = vld [vmem:[#allocation17 + $0x320] sm:$0xff] }
 0x7af   :  { %v3506_v37 = vpop.permute.xlu1 %3505  ;;  %v1085_v44 = vsel %vm360_vm3, %v1084_v33, %v3497_v53  ;;  %v1081_v45 = vsel %vm360_vm3, %v1080_v32, %v3498_v36  ;;  %v3165_v25 = vpack.c.bf16 %v1150_v19, %v1142_v18  ;;  %v1164_v29 = vld [vmem:[#allocation17 + $0x268] sm:$0xff]  ;;  %v1158_v30 = vld [vmem:[#allocation17 + $0x238] sm:$0xff]  ;;  %v3103_v32 = vpack.c.bf16 %v1147_v23, %v1139_v22  ;;  %v1157_v53 = vld [vmem:[#allocation17 + $0x230] sm:$0xff] }
 0x7b0   :  { %v3508_v39 = vunpack.i.h.bf16 %v3506_v37  ;;  %v3507_v40 = vunpack.i.l.bf16 %v3506_v37  ;;  %v3167_v33 = vpack.c.bf16 %v1149_v27, %v1141_v26  ;;  %v3105_v35 = vpack.c.bf16 %v1164_v29, %v1156_v28  ;;  %v1165_v37 = vld [vmem:[#allocation17 + $0x270] sm:$0xff]  ;;  %v1198_v55 = vld [vmem:[#allocation17 + $0x378] sm:$0xff]  ;;  %v1211_v18 = vld [vmem:[#allocation17 + $0x3e0] sm:$0xff] }
 0x7b1   :  { %v3169_v36 = vpack.c.bf16 %v1166_v31, %v1158_v30  ;;  %v3171_v43 = vpack.c.bf16 %v1165_v37, %v1157_v53  ;;  %v3115_v15 = vpack.c.bf16 %v1195_v59, %v1187_v58  ;;  %v1213_v22 = vld [vmem:[#allocation17 + $0x3f0] sm:$0xff]  ;;  %v1220_v23 = vld [vmem:[#allocation17 + $0x428] sm:$0xff]  ;;  %v1230_v26 = vld [vmem:[#allocation17 + $0x478] sm:$0xff]  ;;  %v3119_v27 = vpack.c.bf16 %v1211_v18, %v1203_v17 }
 0x7b2   :  { %v1086_v50 = vsel %vm1082_vm5, %v1085_v44, %v3507_v40  ;;  %v4101_v51 = vsel %vm1082_vm5, %v1081_v45, %v3508_v39  ;;  %v1180_v39 = vld [vmem:[#allocation17 + $0x2e8] sm:$0xff]  ;;  %v1174_v40 = vld [vmem:[#allocation17 + $0x2b8] sm:$0xff]  ;;  %v1171_v44 = vld [vmem:[#allocation17 + $0x2a0] sm:$0xff] }
 0x7b3   :  { %1449 = vmatprep.mubr.f32.mxu1 %v1086_v50  ;;  %1520 = vmatprep.mubr.f32.mxu0 %v1086_v50  ;;  %v1179_v45 = vld [vmem:[#allocation17 + $0x2e0] sm:$0xff]  ;;  %v1246_v53 = vld [vmem:[#allocation17 + $0x4f8] sm:$0xff]  ;;  %v1261_v58 = vld [vmem:[#allocation17 + $0x570] sm:$0xff] }
 0x7b4   :  { %1450 = vmatmul.mubr.f32.vlgmr.msra.gmra.mrb[8].mxu1 %v4101_v51  ;;  %1521 = vmatmul.mubr.f32.vlgmr.msra.gmra.mrb[8].mxu0 %v4101_v51  ;;  %v1219_v29 = vld [vmem:[#allocation17 + $0x420] sm:$0xff]  ;;  %v1268_v59 = vld [vmem:[#allocation17 + $0x5a8] sm:$0xff]  ;;  %v1277_v17 = vld [vmem:[#allocation17 + $0x5f0] sm:$0xff] }
 0x7b5   :  { %3092 = vmatpush1.bf16.msra.mxu1 %v3091_v46  ;;  %3156 = vmatpush1.bf16.msra.mxu0 %v3155_v47  ;;  %v3109_v46 = vpack.c.bf16 %v1180_v39, %v1172_v38  ;;  %v3173_v47 = vpack.c.bf16 %v1182_v41, %v1174_v40  ;;  %v1227_v30 = vld [vmem:[#allocation17 + $0x460] sm:$0xff]  ;;  %v1284_v18 = vld [vmem:[#allocation17 + $0x628] sm:$0xff] }
 0x7b6   :  { %1591 = vmatprep.mubr.f32.mxu1 %v1086_v50  ;;  %1662 = vmatprep.mubr.f32.mxu0 %v1086_v50  ;;  %v1188_v50 = vld [vmem:[#allocation17 + $0x328] sm:$0xff]  ;;  %v3123_v37 = vpack.c.bf16 %v1227_v30, %v1219_v29  ;;  %v1235_v39 = vld [vmem:[#allocation17 + $0x4a0] sm:$0xff]  ;;  %v1293_v29 = vld [vmem:[#allocation17 + $0x670] sm:$0xff] }
 0x7b7   :  { %3094 = vmatprep.subr.bf16.mxu1 %v3093_v56  ;;  %3158 = vmatprep.subr.bf16.mxu0 %v3157_v57  ;;  %v3111_v56 = vpack.c.bf16 %v1179_v45, %v1171_v44  ;;  %v3175_v57 = vpack.c.bf16 %v1181_v49, %v1173_v48  ;;  %v3113_v60 = vpack.c.bf16 %v1196_v52, %v1188_v50  ;;  %v1243_v40 = vld [vmem:[#allocation17 + $0x4e0] sm:$0xff]  ;;  %v1245_v44 = vld [vmem:[#allocation17 + $0x4f0] sm:$0xff]  ;;  %v1252_v45 = vld [vmem:[#allocation17 + $0x528] sm:$0xff] }
 0x7b8   :  { %v1262_v48 = vld [vmem:[#allocation17 + $0x578] sm:$0xff]  ;;  %v3127_v49 = vpack.c.bf16 %v1243_v40, %v1235_v39  ;;  %v1251_v52 = vld [vmem:[#allocation17 + $0x520] sm:$0xff]  ;;  %v1300_v30 = vld [vmem:[#allocation17 + $0x6a8] sm:$0xff] }
 0x7b9   :  { %3096 = vmatpush1.bf16.msra.mxu1 %v3095_v61  ;;  %3160 = vmatpush1.bf16.msra.mxu0 %v3159_v4  ;;  %v3177_v61 = vpack.c.bf16 %v1198_v55, %v1190_v54  ;;  %v1189_v4 = vld [vmem:[#allocation17 + $0x330] sm:$0xff]  ;;  %v1259_v54 = vld [vmem:[#allocation17 + $0x560] sm:$0xff]  ;;  %v1316_v40 = vld [vmem:[#allocation17 + $0x728] sm:$0xff] }
 0x7ba   :  { %3098 = vmatprep.subr.bf16.mxu1 %v3097_v8  ;;  %3162 = vmatprep.subr.bf16.mxu0 %v3161_v13  ;;  %v1212_v8 = vld [vmem:[#allocation17 + $0x3e8] sm:$0xff]  ;;  %v1206_v13 = vld [vmem:[#allocation17 + $0x3b8] sm:$0xff]  ;;  %v3179_v16 = vpack.c.bf16 %v1197_v7, %v1189_v4  ;;  %v3131_v7 = vpack.c.bf16 %v1259_v54, %v1251_v52  ;;  %v1309_v39 = vld [vmem:[#allocation17 + $0x6f0] sm:$0xff] }
 0x7bb   :  { %v3117_v19 = vpack.c.bf16 %v1212_v8, %v1204_v0  ;;  %v1278_v4 = vld [vmem:[#allocation17 + $0x5f8] sm:$0xff]  ;;  %v1267_v8 = vld [vmem:[#allocation17 + $0x5a0] sm:$0xff]  ;;  %v1325_v52 = vld [vmem:[#allocation17 + $0x770] sm:$0xff] }
 0x7bc   :  { %v1332_v54 = vld [vmem:[#allocation17 + $0x7a8] sm:$0xff] }
 0x7bd   :  { %3100 = vmatpush1.bf16.msra.mxu1 %v3099_v20  ;;  %3164 = vmatpush1.bf16.msra.mxu0 %v3163_v21  ;;  %v3181_v20 = vpack.c.bf16 %v1214_v14, %v1206_v13  ;;  %v1205_v21 = vld [vmem:[#allocation17 + $0x3b0] sm:$0xff]  ;;  %v1275_v13 = vld [vmem:[#allocation17 + $0x5e0] sm:$0xff] }
 0x7be   :  { %3102 = vmatprep.subr.bf16.mxu1 %v3101_v24  ;;  %3166 = vmatprep.subr.bf16.mxu0 %v3165_v25  ;;  %v1228_v24 = vld [vmem:[#allocation17 + $0x468] sm:$0xff]  ;;  %v1222_v25 = vld [vmem:[#allocation17 + $0x438] sm:$0xff]  ;;  %v3183_v28 = vpack.c.bf16 %v1213_v22, %v1205_v21  ;;  %v3135_v22 = vpack.c.bf16 %v1275_v13, %v1267_v8  ;;  %v1341_v8 = vld [vmem:[#allocation17 + $0x7f0] sm:$0xff] }
 0x7bf   :  { %v3121_v31 = vpack.c.bf16 %v1228_v24, %v1220_v23  ;;  %v1294_v21 = vld [vmem:[#allocation17 + $0x678] sm:$0xff]  ;;  %v1283_v24 = vld [vmem:[#allocation17 + $0x620] sm:$0xff] }
 0x7c0   :  { %v1813_v13 = vld [vmem:[#allocation20 + $0x80] sm:$0xff] }
 0x7c1   :  { %3104 = vmatpush1.bf16.msra.mxu1 %v3103_v32  ;;  %3168 = vmatpush1.bf16.msra.mxu0 %v3167_v33  ;;  %v3185_v32 = vpack.c.bf16 %v1230_v26, %v1222_v25  ;;  %v1221_v33 = vld [vmem:[#allocation17 + $0x430] sm:$0xff]  ;;  %v1291_v25 = vld [vmem:[#allocation17 + $0x660] sm:$0xff] }
 0x7c2   :  { %3106 = vmatprep.subr.bf16.mxu1 %v3105_v35  ;;  %3170 = vmatprep.subr.bf16.mxu0 %v3169_v36  ;;  %v1244_v35 = vld [vmem:[#allocation17 + $0x4e8] sm:$0xff]  ;;  %v1238_v36 = vld [vmem:[#allocation17 + $0x4b8] sm:$0xff]  ;;  %v3187_v38 = vpack.c.bf16 %v1229_v1, %v1221_v33  ;;  %v3139_v1 = vpack.c.bf16 %v1291_v25, %v1283_v24  ;;  %v1815_v25 = vld [vmem:[#allocation20 + $0x90] sm:$0xff] }
 0x7c3   :  { %v3125_v41 = vpack.c.bf16 %v1244_v35, %v1236_v34  ;;  %v1310_v33 = vld [vmem:[#allocation17 + $0x6f8] sm:$0xff]  ;;  %v1299_v35 = vld [vmem:[#allocation17 + $0x6a0] sm:$0xff]  ;;  %v1830_v24 = vld [vmem:[#allocation20 + $0x108] sm:$0xff] }
 0x7c5   :  { %3108 = vmatpush1.bf16.msra.mxu1 %v3107_v42  ;;  %3172 = vmatpush1.bf16.msra.mxu0 %v3171_v43  ;;  %v3189_v42 = vpack.c.bf16 %v1246_v53, %v1238_v36  ;;  %v1237_v43 = vld [vmem:[#allocation17 + $0x4b0] sm:$0xff]  ;;  %v1307_v36 = vld [vmem:[#allocation17 + $0x6e0] sm:$0xff] }
 0x7c6   :  { %3110 = vmatprep.subr.bf16.mxu1 %v3109_v46  ;;  %3174 = vmatprep.subr.bf16.mxu0 %v3173_v47  ;;  %v1260_v46 = vld [vmem:[#allocation17 + $0x568] sm:$0xff]  ;;  %v1254_v47 = vld [vmem:[#allocation17 + $0x538] sm:$0xff]  ;;  %v3191_v50 = vpack.c.bf16 %v1245_v44, %v1237_v43  ;;  %v3143_v44 = vpack.c.bf16 %v1307_v36, %v1299_v35  ;;  %v1817_v36 = vld [vmem:[#allocation20 + $0xa0] sm:$0xff] }
 0x7c7   :  { %v3129_v55 = vpack.c.bf16 %v1260_v46, %v1252_v45  ;;  %v1326_v43 = vld [vmem:[#allocation17 + $0x778] sm:$0xff]  ;;  %v1315_v46 = vld [vmem:[#allocation17 + $0x720] sm:$0xff] }
 0x7c8   :  { %v1832_v35 = vld [vmem:[#allocation20 + $0x118] sm:$0xff] }
 0x7c9   :  { %3112 = vmatpush1.bf16.msra.mxu1 %v3111_v56  ;;  %3176 = vmatpush1.bf16.msra.mxu0 %v3175_v57  ;;  %v3193_v56 = vpack.c.bf16 %v1262_v48, %v1254_v47  ;;  %v1253_v57 = vld [vmem:[#allocation17 + $0x530] sm:$0xff]  ;;  %v1323_v47 = vld [vmem:[#allocation17 + $0x760] sm:$0xff] }
 0x7ca   :  { %3114 = vmatprep.subr.bf16.mxu1 %v3113_v60  ;;  %3178 = vmatprep.subr.bf16.mxu0 %v3177_v61  ;;  %v1276_v60 = vld [vmem:[#allocation17 + $0x5e8] sm:$0xff]  ;;  %v1270_v61 = vld [vmem:[#allocation17 + $0x5b8] sm:$0xff]  ;;  %v3195_v0 = vpack.c.bf16 %v1261_v58, %v1253_v57  ;;  %v3147_v58 = vpack.c.bf16 %v1323_v47, %v1315_v46  ;;  %v1819_v47 = vld [vmem:[#allocation20 + $0xb0] sm:$0xff] }
 0x7cb   :  { %v3133_v14 = vpack.c.bf16 %v1276_v60, %v1268_v59  ;;  %v1342_v57 = vld [vmem:[#allocation17 + $0x7f8] sm:$0xff]  ;;  %v1331_v60 = vld [vmem:[#allocation17 + $0x7a0] sm:$0xff]  ;;  %v1834_v46 = vld [vmem:[#allocation20 + $0x128] sm:$0xff] }
 0x7cd   :  { %3116 = vmatpush1.bf16.msra.mxu1 %v3115_v15  ;;  %3180 = vmatpush1.bf16.msra.mxu0 %v3179_v16  ;;  %v3197_v15 = vpack.c.bf16 %v1278_v4, %v1270_v61  ;;  %v1269_v16 = vld [vmem:[#allocation17 + $0x5b0] sm:$0xff]  ;;  %v1339_v61 = vld [vmem:[#allocation17 + $0x7e0] sm:$0xff] }
 0x7ce   :  { %3118 = vmatprep.subr.bf16.mxu1 %v3117_v19  ;;  %3182 = vmatprep.subr.bf16.mxu0 %v3181_v20  ;;  %v1292_v19 = vld [vmem:[#allocation17 + $0x668] sm:$0xff]  ;;  %v1286_v20 = vld [vmem:[#allocation17 + $0x638] sm:$0xff]  ;;  %v3199_v23 = vpack.c.bf16 %v1277_v17, %v1269_v16  ;;  %v3151_v17 = vpack.c.bf16 %v1339_v61, %v1331_v60  ;;  %v1821_v60 = vld [vmem:[#allocation20 + $0xc0] sm:$0xff] }
 0x7cf   :  { %v3137_v26 = vpack.c.bf16 %v1292_v19, %v1284_v18  ;;  %v1846_v16 = vld [vmem:[#allocation20 + $0x188] sm:$0xff]  ;;  %v1797_v19 = vld [vmem:[#allocation20] sm:$0xff] }
 0x7d0   :  { %v1822_v61 = vld [vmem:[#allocation20 + $0xc8] sm:$0xff] }
 0x7d1   :  { %3120 = vmatpush1.bf16.msra.mxu1 %v3119_v27  ;;  %3184 = vmatpush1.bf16.msra.mxu0 %v3183_v28  ;;  %v3201_v27 = vpack.c.bf16 %v1294_v21, %v1286_v20  ;;  %v1285_v28 = vld [vmem:[#allocation17 + $0x630] sm:$0xff]  ;;  %v1798_v20 = vld [vmem:[#allocation20 + $0x8] sm:$0xff] }
 0x7d2   :  { %3122 = vmatprep.subr.bf16.mxu1 %v3121_v31  ;;  %3186 = vmatprep.subr.bf16.mxu0 %v3185_v32  ;;  %v1308_v31 = vld [vmem:[#allocation17 + $0x6e8] sm:$0xff]  ;;  %v1302_v32 = vld [vmem:[#allocation17 + $0x6b8] sm:$0xff]  ;;  %v3203_v34 = vpack.c.bf16 %v1293_v29, %v1285_v28  ;;  %v3219_v29 = vpack.c.bf16 %v1798_v20, %v1797_v19  ;;  %v1823_v19 = vld [vmem:[#allocation20 + $0xd0] sm:$0xff] }
 0x7d3   :  { %v3141_v53 = vpack.c.bf16 %v1308_v31, %v1300_v30  ;;  %v1848_v28 = vld [vmem:[#allocation20 + $0x198] sm:$0xff]  ;;  %v1799_v31 = vld [vmem:[#allocation20 + $0x10] sm:$0xff] }
 0x7d4   :  { %v1824_v20 = vld [vmem:[#allocation20 + $0xd8] sm:$0xff] }
 0x7d5   :  { %3124 = vmatpush1.bf16.msra.mxu1 %v3123_v37  ;;  %3188 = vmatpush1.bf16.msra.mxu0 %v3187_v38  ;;  %v3205_v37 = vpack.c.bf16 %v1310_v33, %v1302_v32  ;;  %v1301_v38 = vld [vmem:[#allocation17 + $0x6b0] sm:$0xff]  ;;  %v1800_v32 = vld [vmem:[#allocation20 + $0x18] sm:$0xff] }
 0x7d6   :  { %3126 = vmatprep.subr.bf16.mxu1 %v3125_v41  ;;  %3190 = vmatprep.subr.bf16.mxu0 %v3189_v42  ;;  %v1324_v41 = vld [vmem:[#allocation17 + $0x768] sm:$0xff]  ;;  %v1318_v42 = vld [vmem:[#allocation17 + $0x738] sm:$0xff]  ;;  %v3207_v45 = vpack.c.bf16 %v1309_v39, %v1301_v38  ;;  %v3223_v39 = vpack.c.bf16 %v1800_v32, %v1799_v31  ;;  %v1825_v31 = vld [vmem:[#allocation20 + $0xe0] sm:$0xff] }
 0x7d7   :  { %v3145_v48 = vpack.c.bf16 %v1324_v41, %v1316_v40  ;;  %v1850_v38 = vld [vmem:[#allocation20 + $0x1a8] sm:$0xff]  ;;  %v1801_v41 = vld [vmem:[#allocation20 + $0x20] sm:$0xff] }
 0x7d8   :  { %v1826_v32 = vld [vmem:[#allocation20 + $0xe8] sm:$0xff] }
 0x7d9   :  { %3128 = vmatpush1.bf16.msra.mxu1 %v3127_v49  ;;  %3192 = vmatpush1.bf16.msra.mxu0 %v3191_v50  ;;  %v3209_v49 = vpack.c.bf16 %v1326_v43, %v1318_v42  ;;  %v1317_v50 = vld [vmem:[#allocation17 + $0x730] sm:$0xff]  ;;  %v1802_v42 = vld [vmem:[#allocation20 + $0x28] sm:$0xff] }
 0x7da   :  { %3130 = vmatprep.subr.bf16.mxu1 %v3129_v55  ;;  %3194 = vmatprep.subr.bf16.mxu0 %v3193_v56  ;;  %v1340_v55 = vld [vmem:[#allocation17 + $0x7e8] sm:$0xff]  ;;  %v1334_v56 = vld [vmem:[#allocation17 + $0x7b8] sm:$0xff]  ;;  %v3211_v59 = vpack.c.bf16 %v1325_v52, %v1317_v50  ;;  %v3227_v52 = vpack.c.bf16 %v1802_v42, %v1801_v41  ;;  %v1827_v41 = vld [vmem:[#allocation20 + $0xf0] sm:$0xff] }
 0x7db   :  { %v3149_v4 = vpack.c.bf16 %v1340_v55, %v1332_v54  ;;  %v1852_v50 = vld [vmem:[#allocation20 + $0x1b8] sm:$0xff]  ;;  %v1803_v54 = vld [vmem:[#allocation20 + $0x30] sm:$0xff] }
 0x7dc   :  { %v1804_v55 = vld [vmem:[#allocation20 + $0x38] sm:$0xff] }
 0x7dd   :  { %3132 = vmatpush1.bf16.msra.mxu1 %v3131_v7  ;;  %3196 = vmatpush1.bf16.msra.mxu0 %v3195_v0  ;;  %v3213_v7 = vpack.c.bf16 %v1342_v57, %v1334_v56  ;;  %v1333_v0 = vld [vmem:[#allocation17 + $0x7b0] sm:$0xff]  ;;  %v1828_v42 = vld [vmem:[#allocation20 + $0xf8] sm:$0xff] }
 0x7de   :  { %3134 = vmatprep.subr.bf16.mxu1 %v3133_v14  ;;  %3198 = vmatprep.subr.bf16.mxu0 %v3197_v15  ;;  %v1814_v14 = vld [vmem:[#allocation20 + $0x88] sm:$0xff]  ;;  %v1845_v15 = vld [vmem:[#allocation20 + $0x180] sm:$0xff]  ;;  %v3215_v18 = vpack.c.bf16 %v1341_v8, %v1333_v0  ;;  %v3231_v0 = vpack.c.bf16 %v1804_v55, %v1803_v54 }
 0x7df   :  { %v3217_v21 = vpack.c.bf16 %v1814_v14, %v1813_v13  ;;  %v1805_v13 = vld [vmem:[#allocation20 + $0x40] sm:$0xff]  ;;  %v1806_v14 = vld [vmem:[#allocation20 + $0x48] sm:$0xff] }
 0x7e0   :  { %v1877_v54 = vld [vmem:[#allocation20 + $0x280] sm:$0xff]  ;;  %v1878_v55 = vld [vmem:[#allocation20 + $0x288] sm:$0xff] }
 0x7e1   :  { %3136 = vmatpush1.bf16.msra.mxu1 %v3135_v22  ;;  %3200 = vmatpush1.bf16.msra.mxu0 %v3199_v23  ;;  %v3249_v22 = vpack.c.bf16 %v1846_v16, %v1845_v15  ;;  %v1829_v23 = vld [vmem:[#allocation20 + $0x100] sm:$0xff]  ;;  %v3233_v15 = vpack.c.bf16 %v1822_v61, %v1821_v60  ;;  %v3281_v60 = vpack.c.bf16 %v1878_v55, %v1877_v54  ;;  %v1884_v54 = vld [vmem:[#allocation20 + $0x2b8] sm:$0xff]  ;;  %v1915_v55 = vld [vmem:[#allocation20 + $0x3b0] sm:$0xff] }
 0x7e2   :  { %3138 = vmatprep.subr.bf16.mxu1 %v3137_v26  ;;  %3202 = vmatprep.subr.bf16.mxu0 %v3201_v27  ;;  %v1816_v26 = vld [vmem:[#allocation20 + $0x98] sm:$0xff]  ;;  %v1847_v27 = vld [vmem:[#allocation20 + $0x190] sm:$0xff]  ;;  %v3251_v30 = vpack.c.bf16 %v1830_v24, %v1829_v23  ;;  %v3235_v23 = vpack.c.bf16 %v1806_v14, %v1805_v13  ;;  %v330_v13 = vsub.s32 2, %v4047_v5 }
 0x7e3   :  { %v3221_v33 = vpack.c.bf16 %v1816_v26, %v1815_v25  ;;  %v1807_v25 = vld [vmem:[#allocation20 + $0x50] sm:$0xff]  ;;  %v1808_v26 = vld [vmem:[#allocation20 + $0x58] sm:$0xff] }
 0x7e5   :  { %3140 = vmatpush1.bf16.msra.mxu1 %v3139_v1  ;;  %3204 = vmatpush1.bf16.msra.mxu0 %v3203_v34  ;;  %v3253_v1 = vpack.c.bf16 %v1848_v28, %v1847_v27  ;;  %v1831_v34 = vld [vmem:[#allocation20 + $0x110] sm:$0xff]  ;;  %v3237_v27 = vpack.c.bf16 %v1824_v20, %v1823_v19  ;;  %v1893_v20 = vld [vmem:[#allocation20 + $0x300] sm:$0xff] }
 0x7e6   :  { %3142 = vmatprep.subr.bf16.mxu1 %v3141_v53  ;;  %3206 = vmatprep.subr.bf16.mxu0 %v3205_v37  ;;  %v1818_v53 = vld [vmem:[#allocation20 + $0xa8] sm:$0xff]  ;;  %v1849_v37 = vld [vmem:[#allocation20 + $0x1a0] sm:$0xff]  ;;  %v3255_v40 = vpack.c.bf16 %v1832_v35, %v1831_v34  ;;  %v3239_v34 = vpack.c.bf16 %v1808_v26, %v1807_v25  ;;  %v1880_v25 = vld [vmem:[#allocation20 + $0x298] sm:$0xff] }
 0x7e7   :  { %v3225_v43 = vpack.c.bf16 %v1818_v53, %v1817_v36  ;;  %v1809_v36 = vld [vmem:[#allocation20 + $0x60] sm:$0xff]  ;;  %v1810_v53 = vld [vmem:[#allocation20 + $0x68] sm:$0xff]  ;;  %v1911_v26 = vld [vmem:[#allocation20 + $0x390] sm:$0xff] }
 0x7e9   :  { %3144 = vmatpush1.bf16.msra.mxu1 %v3143_v44  ;;  %3208 = vmatpush1.bf16.msra.mxu0 %v3207_v45  ;;  %v3257_v44 = vpack.c.bf16 %v1850_v38, %v1849_v37  ;;  %v1833_v45 = vld [vmem:[#allocation20 + $0x120] sm:$0xff]  ;;  %v3241_v37 = vpack.c.bf16 %v1826_v32, %v1825_v31 }
 0x7ea   :  { %3146 = vmatprep.subr.bf16.mxu1 %v3145_v48  ;;  %3210 = vmatprep.subr.bf16.mxu0 %v3209_v49  ;;  %v1820_v48 = vld [vmem:[#allocation20 + $0xb8] sm:$0xff]  ;;  %v1851_v49 = vld [vmem:[#allocation20 + $0x1b0] sm:$0xff] }
 0x7eb   :  { %v3229_v56 = vpack.c.bf16 %v1820_v48, %v1819_v47  ;;  %v3261_v57 = vpack.c.bf16 %v1852_v50, %v1851_v49  ;;  %v1811_v47 = vld [vmem:[#allocation20 + $0x70] sm:$0xff]  ;;  %v3245_v48 = vpack.c.bf16 %v1828_v42, %v1827_v41  ;;  %v1812_v50 = vld [vmem:[#allocation20 + $0x78] sm:$0xff]  ;;  %v1882_v41 = vld [vmem:[#allocation20 + $0x2a8] sm:$0xff] }
 0x7ec   :  { %v1913_v42 = vld [vmem:[#allocation20 + $0x3a0] sm:$0xff] }
 0x7ed   :  { %3148 = vmatpush1.bf16.msra.mxu1 %v3147_v58  ;;  %3212 = vmatpush1.bf16.msra.mxu0 %v3211_v59  ;;  %v1835_v58 = vld [vmem:[#allocation20 + $0x130] sm:$0xff]  ;;  %v1836_v59 = vld [vmem:[#allocation20 + $0x138] sm:$0xff] }
 0x7ee   :  { %3150 = vmatprep.subr.bf16.mxu1 %v3149_v4  ;;  %3214 = vmatprep.subr.bf16.mxu0 %v3213_v7  ;;  %v1853_v4 = vld [vmem:[#allocation20 + $0x1c0] sm:$0xff]  ;;  %v1854_v7 = vld [vmem:[#allocation20 + $0x1c8] sm:$0xff]  ;;  %v3263_v8 = vpack.c.bf16 %v1836_v59, %v1835_v58 }
 0x7ef   :  { %v3265_v16 = vpack.c.bf16 %v1854_v7, %v1853_v4  ;;  %v1910_v59 = vld [vmem:[#allocation20 + $0x388] sm:$0xff]  ;;  %v4110_v4 = vld [vmem:[%s4199_s10] sm:$0xff]  ;;  %v326_v7 = vsub.s32 1, %v4047_v5 }
 0x7f0   :  { %v1356_v19 = vrot.slane %v4110_v4, %v330_v13 }
 0x7f1   :  { %3152 = vmatpush1.bf16.msra.mxu1 %v3151_v17  ;;  %3216 = vmatpush1.bf16.msra.mxu0 %v3215_v18  ;;  %v1837_v17 = vld [vmem:[#allocation20 + $0x140] sm:$0xff]  ;;  %v1838_v18 = vld [vmem:[#allocation20 + $0x148] sm:$0xff]  ;;  %v1352_v14 = vrot.slane %v4110_v4, %v326_v7 }
 0x7f2   :  { %3218 = vmatprep.subr.bf16.mxu1 %v3217_v21  ;;  %3250 = vmatprep.subr.bf16.mxu0 %v3249_v22  ;;  %v1855_v21 = vld [vmem:[#allocation20 + $0x1d0] sm:$0xff]  ;;  %v1856_v22 = vld [vmem:[#allocation20 + $0x1d8] sm:$0xff]  ;;  %v3267_v24 = vpack.c.bf16 %v1838_v18, %v1837_v17  ;;  %v1862_v17 = vld [vmem:[#allocation20 + $0x208] sm:$0xff] }
 0x7f3   :  { %v3269_v28 = vpack.c.bf16 %v1856_v22, %v1855_v21  ;;  %v1894_v21 = vld [vmem:[#allocation20 + $0x308] sm:$0xff]  ;;  %v1879_v22 = vld [vmem:[#allocation20 + $0x290] sm:$0xff] }
 0x7f4   :  { %1592 = vmatmul.mubr.f32.vlgmr.msra.gmra.mrb[10].mxu1 %v4101_v51  ;;  %1663 = vmatmul.mubr.f32.vlgmr.msra.gmra.mrb[10].mxu0 %v4101_v51  ;;  %v3259_v51 = vpack.c.bf16 %v1834_v46, %v1833_v45  ;;  %v3243_v45 = vpack.c.bf16 %v1810_v53, %v1809_v36  ;;  %v3285_v53 = vpack.c.bf16 %v1880_v25, %v1879_v22 }
 0x7f5   :  { %3220 = vmatpush3.bf16.msra.mxu1 %v3219_v29  ;;  %3252 = vmatpush3.bf16.msra.mxu0 %v3251_v30  ;;  %v1839_v29 = vld [vmem:[#allocation20 + $0x150] sm:$0xff]  ;;  %v1840_v30 = vld [vmem:[#allocation20 + $0x158] sm:$0xff] }
 0x7f6   :  { %3222 = vmatprep.subr.bf16.mxu1 %v3221_v33  ;;  %3254 = vmatprep.subr.bf16.mxu0 %v3253_v1  ;;  %v1857_v33 = vld [vmem:[#allocation20 + $0x1e0] sm:$0xff]  ;;  %v1858_v1 = vld [vmem:[#allocation20 + $0x1e8] sm:$0xff]  ;;  %v3271_v35 = vpack.c.bf16 %v1840_v30, %v1839_v29 }
 0x7f7   :  { %v3273_v38 = vpack.c.bf16 %v1858_v1, %v1857_v33  ;;  %v3315_v33 = vpack.c.bf16 %v1894_v21, %v1893_v20  ;;  %v1863_v1 = vld [vmem:[#allocation20 + $0x210] sm:$0xff]  ;;  %v1918_v20 = vld [vmem:[#allocation20 + $0x3c8] sm:$0xff] }
 0x7f9   :  { %3224 = vmatpush3.bf16.msra.mxu1 %v3223_v39  ;;  %3256 = vmatpush3.bf16.msra.mxu0 %v3255_v40  ;;  %v1841_v39 = vld [vmem:[#allocation20 + $0x160] sm:$0xff]  ;;  %v1842_v40 = vld [vmem:[#allocation20 + $0x168] sm:$0xff] }
 0x7fa   :  { %3226 = vmatprep.subr.bf16.mxu1 %v3225_v43  ;;  %3258 = vmatprep.subr.bf16.mxu0 %v3257_v44  ;;  %v1859_v43 = vld [vmem:[#allocation20 + $0x1f0] sm:$0xff]  ;;  %v1860_v44 = vld [vmem:[#allocation20 + $0x1f8] sm:$0xff]  ;;  %v3275_v46 = vpack.c.bf16 %v1842_v40, %v1841_v39  ;;  %v1881_v40 = vld [vmem:[#allocation20 + $0x2a0] sm:$0xff] }
 0x7fb   :  { %v3277_v49 = vpack.c.bf16 %v1860_v44, %v1859_v43  ;;  %v1896_v39 = vld [vmem:[#allocation20 + $0x318] sm:$0xff]  ;;  %v1914_v43 = vld [vmem:[#allocation20 + $0x3a8] sm:$0xff] }
 0x7fd   :  { %3228 = vmatpush3.bf16.msra.mxu1 %v3227_v52  ;;  %3260 = vmatpush3.bf16.msra.mxu0 %v3259_v51  ;;  %v1843_v52 = vld [vmem:[#allocation20 + $0x170] sm:$0xff]  ;;  %v1844_v51 = vld [vmem:[#allocation20 + $0x178] sm:$0xff] }
 0x7fe   :  { %3230 = vmatprep.subr.bf16.mxu1 %v3229_v56  ;;  %3262 = vmatprep.subr.bf16.mxu0 %v3261_v57  ;;  %v1909_v56 = vld [vmem:[#allocation20 + $0x380] sm:$0xff]  ;;  %v3247_v57 = vpack.c.bf16 %v1812_v50, %v1811_v47  ;;  %v3279_v58 = vpack.c.bf16 %v1844_v51, %v1843_v52  ;;  %v1866_v47 = vld [vmem:[#allocation20 + $0x228] sm:$0xff]  ;;  %v1883_v51 = vld [vmem:[#allocation20 + $0x2b0] sm:$0xff] }
 0x7ff   :  { %v3313_v61 = vpack.c.bf16 %v1910_v59, %v1909_v56  ;;  %v1897_v50 = vld [vmem:[#allocation20 + $0x320] sm:$0xff]  ;;  %v1898_v52 = vld [vmem:[#allocation20 + $0x328] sm:$0xff]  ;;  %v1916_v56 = vld [vmem:[#allocation20 + $0x3b8] sm:$0xff] }
 0x800   :  { %v1867_v59 = vld [vmem:[#allocation20 + $0x230] sm:$0xff] }
 0x801   :  { %3232 = vmatpush3.bf16.msra.mxu1 %v3231_v0  ;;  %3264 = vmatpush3.bf16.msra.mxu0 %v3263_v8  ;;  %v334_v0 = vsub.s32 3, %v4047_v5  ;;  %v322_v8 = vsub.s32 0, %v4047_v5 }
 0x802   :  { %3234 = vmatprep.subr.bf16.mxu1 %v3233_v15  ;;  %3266 = vmatprep.subr.bf16.mxu0 %v3265_v16  ;;  %v1861_v16 = vld [vmem:[#allocation20 + $0x200] sm:$0xff] }
 0x803   :  { %v1360_v15 = vrot.slane %v4110_v4, %v334_v0  ;;  %v1348_v18 = vrot.slane %v4110_v4, %v322_v8  ;;  %v3283_v32 = vpack.c.bf16 %v1862_v17, %v1861_v16  ;;  %v1900_v16 = vld [vmem:[#allocation20 + $0x338] sm:$0xff]  ;;  %v1885_v17 = vld [vmem:[#allocation20 + $0x2c0] sm:$0xff] }
 0x805   :  { %3236 = vmatpush3.bf16.msra.mxu1 %v3235_v23  ;;  %3268 = vmatpush3.bf16.msra.mxu0 %v3267_v24 }
 0x806   :  { %3238 = vmatprep.subr.bf16.mxu1 %v3237_v27  ;;  %3270 = vmatprep.subr.bf16.mxu0 %v3269_v28  ;;  %v1912_v27 = vld [vmem:[#allocation20 + $0x398] sm:$0xff] }
 0x809   :  { %3240 = vmatpush3.bf16.msra.mxu1 %v3239_v34  ;;  %3272 = vmatpush3.bf16.msra.mxu0 %v3271_v35  ;;  %v1864_v34 = vld [vmem:[#allocation20 + $0x218] sm:$0xff] }
 0x80a   :  { %3242 = vmatprep.subr.bf16.mxu1 %v3241_v37  ;;  %3274 = vmatprep.subr.bf16.mxu0 %v3273_v38  ;;  %v3317_v37 = vpack.c.bf16 %v1912_v27, %v1911_v26  ;;  %v1895_v38 = vld [vmem:[#allocation20 + $0x310] sm:$0xff]  ;;  %v3287_v44 = vpack.c.bf16 %v1864_v34, %v1863_v1  ;;  %v1901_v27 = vld [vmem:[#allocation20 + $0x340] sm:$0xff] }
 0x80b   :  { %v1871_v34 = vld [vmem:[#allocation20 + $0x250] sm:$0xff] }
 0x80d   :  { %3244 = vmatpush3.bf16.msra.mxu1 %v3243_v45  ;;  %3276 = vmatpush3.bf16.msra.mxu0 %v3275_v46  ;;  %v3319_v45 = vpack.c.bf16 %v1896_v39, %v1895_v38  ;;  %v1865_v46 = vld [vmem:[#allocation20 + $0x220] sm:$0xff]  ;;  %v1904_v38 = vld [vmem:[#allocation20 + $0x358] sm:$0xff] }
 0x80e   :  { %3246 = vmatprep.subr.bf16.mxu1 %v3245_v48  ;;  %3278 = vmatprep.subr.bf16.mxu0 %v3277_v49  ;;  %v3289_v48 = vpack.c.bf16 %v1882_v41, %v1881_v40  ;;  %v3321_v49 = vpack.c.bf16 %v1914_v43, %v1913_v42  ;;  %v1889_v39 = vld [vmem:[#allocation20 + $0x2e0] sm:$0xff]  ;;  %v1890_v40 = vld [vmem:[#allocation20 + $0x2e8] sm:$0xff] }
 0x80f   :  { %v1921_v41 = vld [vmem:[#allocation20 + $0x3e0] sm:$0xff]  ;;  %v1922_v42 = vld [vmem:[#allocation20 + $0x3e8] sm:$0xff] }
 0x811   :  { %3248 = vmatpush3.bf16.msra.mxu1 %v3247_v57  ;;  %3280 = vmatpush3.bf16.msra.mxu0 %v3279_v58  ;;  %v3291_v57 = vpack.c.bf16 %v1866_v47, %v1865_v46  ;;  %v3323_v58 = vpack.c.bf16 %v1898_v52, %v1897_v50  ;;  %v1874_v46 = vld [vmem:[#allocation20 + $0x268] sm:$0xff]  ;;  %v3305_v47 = vpack.c.bf16 %v1890_v40, %v1889_v39  ;;  %v1891_v52 = vld [vmem:[#allocation20 + $0x2f0] sm:$0xff]  ;;  %v1688_v40 = vld [vmem:[#allocation18 + $0x98] sm:$0xff] }
 0x812   :  { %3282 = vmatprep.subr.bf16.mxu1 %v3281_v60  ;;  %3314 = vmatprep.subr.bf16.mxu0 %v3313_v61  ;;  %v1868_v60 = vld [vmem:[#allocation20 + $0x238] sm:$0xff]  ;;  %v3293_v61 = vpack.c.bf16 %v1884_v54, %v1883_v51  ;;  %v1906_v50 = vld [vmem:[#allocation20 + $0x368] sm:$0xff]  ;;  %v1923_v54 = vld [vmem:[#allocation20 + $0x3f0] sm:$0xff] }
 0x813   :  { %v3295_v21 = vpack.c.bf16 %v1868_v60, %v1867_v59  ;;  %v1892_v51 = vld [vmem:[#allocation20 + $0x2f8] sm:$0xff] }
 0x814   :  { %v1876_v59 = vld [vmem:[#allocation20 + $0x278] sm:$0xff]  ;;  %v3309_v60 = vpack.c.bf16 %v1892_v51, %v1891_v52 }
 0x815   :  { %v1704_v52 = vld [vmem:[#allocation18 + $0x118] sm:$0xff] }
 0x887   :  { %v1451_v23 = vpop.f32.mrb[8].mxu1  ;;  %v1522_v24 = vpop.f32.mrb[8].mxu0 }
 0x888   :  { %v1453_v28 = vpop.f32.mrb[9].mxu1  ;;  %v1524_v29 = vpop.f32.mrb[9].mxu0  ;;  %v1452_v35 = vadd.f32 %v1451_v23, %v1348_v18  ;;  %v1523_v36 = vadd.f32 %v1522_v24, %v1356_v19  ;;  %v1886_v18 = vld [vmem:[#allocation20 + $0x2c8] sm:$0xff]  ;;  %v1917_v19 = vld [vmem:[#allocation20 + $0x3c0] sm:$0xff] }
 0x889   :  { %v1454_v30 = vadd.f32 %v1453_v28, %v1352_v14  ;;  %v1525_v31 = vadd.f32 %v1524_v29, %v1360_v15  ;;  %v3325_v14 = vpack.c.bf16 %v1916_v56, %v1915_v55  ;;  %v1899_v15 = vld [vmem:[#allocation20 + $0x330] sm:$0xff]  ;;  %v1869_v23 = vld [vmem:[#allocation20 + $0x240] sm:$0xff]  ;;  %v1870_v24 = vld [vmem:[#allocation20 + $0x248] sm:$0xff]  ;;  %v3297_v25 = vpack.c.bf16 %v1886_v18, %v1885_v17 }
 0x88a   :  { %v3327_v22 = vpack.c.bf16 %v1900_v16, %v1899_v15  ;;  %v3329_v26 = vpack.c.bf16 %v1918_v20, %v1917_v19  ;;  %v1902_v28 = vld [vmem:[#allocation20 + $0x348] sm:$0xff]  ;;  %v1887_v29 = vld [vmem:[#allocation20 + $0x2d0] sm:$0xff]  ;;  %v1924_v55 = vld [vmem:[#allocation20 + $0x3f8] sm:$0xff] }
 0x88b   :  { %1989 = vmatprep.mubr.f32.mxu1 %v1454_v30  ;;  %2059 = vmatprep.mubr.f32.mxu0 %v1525_v31  ;;  %v1888_v30 = vld [vmem:[#allocation20 + $0x2d8] sm:$0xff]  ;;  %v1919_v31 = vld [vmem:[#allocation20 + $0x3d0] sm:$0xff]  ;;  %v3331_v1 = vpack.c.bf16 %v1902_v28, %v1901_v27  ;;  %v1685_v16 = vld [vmem:[#allocation18 + $0x80] sm:$0xff] }
 0x88c   :  { %1990 = vmatmul.mubr.f32.vlgmr.msra.gmra.mrb[12].mxu1 %v1452_v35  ;;  %2060 = vmatmul.mubr.f32.vlgmr.msra.gmra.mrb[12].mxu0 %v1523_v36  ;;  %v1872_v35 = vld [vmem:[#allocation20 + $0x258] sm:$0xff]  ;;  %v3301_v36 = vpack.c.bf16 %v1888_v30, %v1887_v29  ;;  %v1686_v17 = vld [vmem:[#allocation18 + $0x88] sm:$0xff]  ;;  %v1717_v18 = vld [vmem:[#allocation18 + $0x180] sm:$0xff]  ;;  %v1364_v30 = vrot.slane %v4110_v4, %v338_v6 }
 0x88d   :  { %3284 = vmatpush3.bf16.msra.mxu1 %v3283_v32  ;;  %3316 = vmatpush3.bf16.msra.mxu0 %v3315_v33  ;;  %v1920_v32 = vld [vmem:[#allocation20 + $0x3d8] sm:$0xff]  ;;  %v3299_v33 = vpack.c.bf16 %v1870_v24, %v1869_v23  ;;  %v3303_v43 = vpack.c.bf16 %v1872_v35, %v1871_v34  ;;  %v1718_v19 = vld [vmem:[#allocation18 + $0x188] sm:$0xff]  ;;  %v342_v24 = vsub.s32 5, %v4047_v5  ;;  %v1669_v29 = vld [vmem:[#allocation18] sm:$0xff] }
 0x88e   :  { %3286 = vmatprep.subr.bf16.mxu1 %v3285_v53  ;;  %3318 = vmatprep.subr.bf16.mxu0 %v3317_v37  ;;  %v3333_v53 = vpack.c.bf16 %v1920_v32, %v1919_v31  ;;  %v1903_v37 = vld [vmem:[#allocation20 + $0x350] sm:$0xff]  ;;  %v1908_v15 = vld [vmem:[#allocation20 + $0x378] sm:$0xff]  ;;  %v3377_v23 = vpack.c.bf16 %v1718_v19, %v1717_v18  ;;  %v1670_v32 = vld [vmem:[#allocation18 + $0x8] sm:$0xff] }
 0x88f   :  { %v1368_v27 = vrot.slane %v4110_v4, %v342_v24  ;;  %v1706_v18 = vld [vmem:[#allocation18 + $0x128] sm:$0xff]  ;;  %v1691_v19 = vld [vmem:[#allocation18 + $0xb0] sm:$0xff] }
 0x891   :  { %3288 = vmatpush3.bf16.msra.mxu1 %v3287_v44  ;;  %3320 = vmatpush3.bf16.msra.mxu0 %v3319_v45  ;;  %v3335_v44 = vpack.c.bf16 %v1904_v38, %v1903_v37  ;;  %v1873_v45 = vld [vmem:[#allocation20 + $0x260] sm:$0xff] }
 0x892   :  { %3290 = vmatprep.subr.bf16.mxu1 %v3289_v48  ;;  %3322 = vmatprep.subr.bf16.mxu0 %v3321_v49  ;;  %v3337_v48 = vpack.c.bf16 %v1922_v42, %v1921_v41  ;;  %v1905_v49 = vld [vmem:[#allocation20 + $0x360] sm:$0xff]  ;;  %v3307_v56 = vpack.c.bf16 %v1874_v46, %v1873_v45  ;;  %v1720_v41 = vld [vmem:[#allocation18 + $0x198] sm:$0xff]  ;;  %v1671_v46 = vld [vmem:[#allocation18 + $0x10] sm:$0xff] }
 0x895   :  { %3292 = vmatpush3.bf16.msra.mxu1 %v3291_v57  ;;  %3324 = vmatpush3.bf16.msra.mxu0 %v3323_v58  ;;  %v3339_v57 = vpack.c.bf16 %v1906_v50, %v1905_v49  ;;  %v1875_v58 = vld [vmem:[#allocation20 + $0x270] sm:$0xff] }
 0x896   :  { %3294 = vmatprep.subr.bf16.mxu1 %v3293_v61  ;;  %3326 = vmatprep.subr.bf16.mxu0 %v3325_v14  ;;  %v3341_v61 = vpack.c.bf16 %v1924_v55, %v1923_v54  ;;  %v1907_v14 = vld [vmem:[#allocation20 + $0x370] sm:$0xff]  ;;  %v3311_v20 = vpack.c.bf16 %v1876_v59, %v1875_v58  ;;  %v1690_v54 = vld [vmem:[#allocation18 + $0xa8] sm:$0xff]  ;;  %v1721_v55 = vld [vmem:[#allocation18 + $0x1a0] sm:$0xff] }
 0x897   :  { %v1703_v50 = vld [vmem:[#allocation18 + $0x110] sm:$0xff] }
 0x899   :  { %3296 = vmatpush3.bf16.msra.mxu1 %v3295_v21  ;;  %3328 = vmatpush3.bf16.msra.mxu0 %v3327_v22  ;;  %v3343_v21 = vpack.c.bf16 %v1908_v15, %v1907_v14  ;;  %v3345_v22 = vpack.c.bf16 %v1686_v17, %v1685_v16  ;;  %v1674_v14 = vld [vmem:[#allocation18 + $0x28] sm:$0xff]  ;;  %v1705_v17 = vld [vmem:[#allocation18 + $0x120] sm:$0xff] }
 0x89a   :  { %3298 = vmatprep.subr.bf16.mxu1 %v3297_v25  ;;  %3330 = vmatprep.subr.bf16.mxu0 %v3329_v26  ;;  %v350_v25 = vsub.s32 7, %v4047_v5  ;;  %v346_v26 = vsub.s32 6, %v4047_v5 }
 0x89c   :  { %v1376_v28 = vrot.slane %v4110_v4, %v350_v25  ;;  %v1372_v31 = vrot.slane %v4110_v4, %v346_v26  ;;  %v1719_v4 = vld [vmem:[#allocation18 + $0x190] sm:$0xff] }
 0x89d   :  { %3300 = vmatpush3.bf16.msra.mxu1 %v3299_v33  ;;  %3332 = vmatpush3.bf16.msra.mxu0 %v3331_v1  ;;  %v1701_v33 = vld [vmem:[#allocation18 + $0x100] sm:$0xff]  ;;  %v1702_v1 = vld [vmem:[#allocation18 + $0x108] sm:$0xff] }
 0x89e   :  { %3302 = vmatprep.subr.bf16.mxu1 %v3301_v36  ;;  %3334 = vmatprep.subr.bf16.mxu0 %v3333_v53  ;;  %v1687_v36 = vld [vmem:[#allocation18 + $0x90] sm:$0xff]  ;;  %v4143_v53 = vld [vmem:[#allocation14] sm:$0xff]  ;;  %v3379_v45 = vpack.c.bf16 %v1702_v1, %v1701_v33  ;;  %v1694_v33 = vld [vmem:[#allocation18 + $0xc8] sm:$0xff] }
 0x89f   :  { %v327_v37 = vrot.slane %v4143_v53, %v326_v7  ;;  %v335_v6 = vrot.slane %v4143_v53, %v334_v0  ;;  %v1689_v7 = vld [vmem:[#allocation18 + $0xa0] sm:$0xff]  ;;  %v3349_v51 = vpack.c.bf16 %v1688_v40, %v1687_v36  ;;  %v3381_v0 = vpack.c.bf16 %v1720_v41, %v1719_v4  ;;  %v1710_v4 = vld [vmem:[#allocation18 + $0x148] sm:$0xff]  ;;  %v1695_v41 = vld [vmem:[#allocation18 + $0xd0] sm:$0xff] }
 0x8a0   :  { %v3353_v15 = vpack.c.bf16 %v1690_v54, %v1689_v7  ;;  %v1725_v1 = vld [vmem:[#allocation18 + $0x1c0] sm:$0xff]  ;;  %v1712_v7 = vld [vmem:[#allocation18 + $0x158] sm:$0xff] }
 0x8a1   :  { %3304 = vmatpush3.bf16.msra.mxu1 %v3303_v43  ;;  %3336 = vmatpush3.bf16.msra.mxu0 %v3335_v44  ;;  %v3347_v44 = vpack.c.bf16 %v1670_v32, %v1669_v29  ;;  %v504_v58 = vadd.f32 %v4045_v3, %v335_v6  ;;  %v1724_v3 = vld [vmem:[#allocation18 + $0x1b8] sm:$0xff]  ;;  %v1693_v32 = vld [vmem:[#allocation18 + $0xc0] sm:$0xff]  ;;  %v1678_v6 = vld [vmem:[#allocation18 + $0x48] sm:$0xff] }
 0x8a2   :  { %3306 = vmatprep.subr.bf16.mxu1 %v3305_v47  ;;  %3338 = vmatprep.subr.bf16.mxu0 %v3337_v48  ;;  %v1672_v47 = vld [vmem:[#allocation18 + $0x18] sm:$0xff]  ;;  %v1709_v40 = vld [vmem:[#allocation18 + $0x140] sm:$0xff] }
 0x8a3   :  { %v3351_v59 = vpack.c.bf16 %v1672_v47, %v1671_v46  ;;  %v3395_v46 = vpack.c.bf16 %v1710_v4, %v1709_v40  ;;  %v1679_v47 = vld [vmem:[#allocation18 + $0x50] sm:$0xff]  ;;  %v1729_v54 = vld [vmem:[#allocation18 + $0x1e0] sm:$0xff] }
 0x8a4   :  { %v1765_v40 = vld [vmem:[#allocation18 + $0x300] sm:$0xff]  ;;  %v1751_v4 = vld [vmem:[#allocation18 + $0x290] sm:$0xff] }
 0x8a5   :  { %3308 = vmatpush3.bf16.msra.mxu1 %v3307_v56  ;;  %3340 = vmatpush3.bf16.msra.mxu0 %v3339_v57  ;;  %v1722_v56 = vld [vmem:[#allocation18 + $0x1a8] sm:$0xff]  ;;  %v433_v57 = vadd.f32 %v4043_v2, %v327_v37  ;;  %v1692_v2 = vld [vmem:[#allocation18 + $0xb8] sm:$0xff]  ;;  %v1677_v37 = vld [vmem:[#allocation18 + $0x40] sm:$0xff] }
 0x8a6   :  { %3310 = vmatprep.subr.bf16.mxu1 %v3309_v60  ;;  %3342 = vmatprep.subr.bf16.mxu0 %v3341_v61  ;;  %v3383_v60 = vpack.c.bf16 %v1704_v52, %v1703_v50  ;;  %v1673_v61 = vld [vmem:[#allocation18 + $0x20] sm:$0xff]  ;;  %v3385_v16 = vpack.c.bf16 %v1722_v56, %v1721_v55  ;;  %v1711_v52 = vld [vmem:[#allocation18 + $0x150] sm:$0xff]  ;;  %v1730_v55 = vld [vmem:[#allocation18 + $0x1e8] sm:$0xff] }
 0x8a9   :  { %3312 = vmatpush3.bf16.msra.mxu1 %v3311_v20  ;;  %3344 = vmatpush3.bf16.msra.mxu0 %v3343_v21  ;;  %v1723_v20 = vld [vmem:[#allocation18 + $0x1b0] sm:$0xff]  ;;  %v3355_v21 = vpack.c.bf16 %v1674_v14, %v1673_v61  ;;  %v3401_v61 = vpack.c.bf16 %v1730_v55, %v1729_v54  ;;  %v1713_v14 = vld [vmem:[#allocation18 + $0x160] sm:$0xff]  ;;  %v1786_v55 = vld [vmem:[#allocation18 + $0x3a8] sm:$0xff] }
 0x8aa   :  { %3346 = vmatprep.subr.bf16.mxu1 %v3345_v22  ;;  %3378 = vmatprep.subr.bf16.mxu0 %v3377_v23  ;;  %v3387_v22 = vpack.c.bf16 %v1706_v18, %v1705_v17  ;;  %v1675_v23 = vld [vmem:[#allocation18 + $0x30] sm:$0xff]  ;;  %v3389_v29 = vpack.c.bf16 %v1724_v3, %v1723_v20  ;;  %v1700_v17 = vld [vmem:[#allocation18 + $0xf8] sm:$0xff] }
 0x8ab   :  { %v1731_v18 = vld [vmem:[#allocation18 + $0x1f0] sm:$0xff] }
 0x8ac   :  { %v1683_v3 = vld [vmem:[#allocation18 + $0x70] sm:$0xff] }
 0x8c7   :  { %v1593_v34 = vpop.f32.mrb[10].mxu1  ;;  %v1664_v35 = vpop.f32.mrb[10].mxu0 }
 0x8c8   :  { %v1595_v38 = vpop.f32.mrb[11].mxu1  ;;  %v1666_v39 = vpop.f32.mrb[11].mxu0  ;;  %v1594_v48 = vadd.f32 %v1593_v34, %v1364_v30  ;;  %v1665_v49 = vadd.f32 %v1664_v35, %v1372_v31  ;;  %v1707_v30 = vld [vmem:[#allocation18 + $0x130] sm:$0xff]  ;;  %v1708_v31 = vld [vmem:[#allocation18 + $0x138] sm:$0xff]  ;;  %v1726_v34 = vld [vmem:[#allocation18 + $0x1c8] sm:$0xff] }
 0x8c9   :  { %v1596_v42 = vadd.f32 %v1595_v38, %v1368_v27  ;;  %v1667_v43 = vadd.f32 %v1666_v39, %v1376_v28  ;;  %v1676_v27 = vld [vmem:[#allocation18 + $0x38] sm:$0xff]  ;;  %v3357_v28 = vpack.c.bf16 %v1692_v2, %v1691_v19  ;;  %v3391_v36 = vpack.c.bf16 %v1708_v31, %v1707_v30  ;;  %v1750_v30 = vld [vmem:[#allocation18 + $0x288] sm:$0xff]  ;;  %v1781_v31 = vld [vmem:[#allocation18 + $0x380] sm:$0xff] }
 0x8ca   :  { %v3359_v35 = vpack.c.bf16 %v1676_v27, %v1675_v23  ;;  %v3361_v38 = vpack.c.bf16 %v1694_v33, %v1693_v32  ;;  %v3393_v39 = vpack.c.bf16 %v1726_v34, %v1725_v1  ;;  %v1732_v19 = vld [vmem:[#allocation18 + $0x1f8] sm:$0xff]  ;;  %v1715_v27 = vld [vmem:[#allocation18 + $0x170] sm:$0xff]  ;;  %v1782_v32 = vld [vmem:[#allocation18 + $0x388] sm:$0xff]  ;;  %v323_v33 = vrot.slane %v4143_v53, %v322_v8 }
 0x8cb   :  { %2129 = vmatprep.mubr.f32.mxu1 %v1596_v42  ;;  %2199 = vmatprep.mubr.f32.mxu0 %v1667_v43  ;;  %v1696_v42 = vld [vmem:[#allocation18 + $0xd8] sm:$0xff]  ;;  %v1727_v43 = vld [vmem:[#allocation18 + $0x1d0] sm:$0xff]  ;;  %v3405_v23 = vpack.c.bf16 %v1732_v19, %v1731_v18  ;;  %v1766_v8 = vld [vmem:[#allocation18 + $0x308] sm:$0xff] }
 0x8cc   :  { %2130 = vmatmul.mubr.f32.vlgmr.msra.gmra.mrb[14].mxu1 %v1594_v48  ;;  %2200 = vmatmul.mubr.f32.vlgmr.msra.gmra.mrb[14].mxu0 %v1665_v49  ;;  %v1680_v48 = vld [vmem:[#allocation18 + $0x58] sm:$0xff]  ;;  %v3365_v49 = vpack.c.bf16 %v1696_v42, %v1695_v41  ;;  %v351_v41 = vrot.slane %v4143_v53, %v350_v25 }
 0x8cd   :  { %3348 = vmatpush3.bf16.msra.mxu1 %v3347_v44  ;;  %3380 = vmatpush3.bf16.msra.mxu0 %v3379_v45  ;;  %v1728_v44 = vld [vmem:[#allocation18 + $0x1d8] sm:$0xff]  ;;  %v3363_v45 = vpack.c.bf16 %v1678_v6, %v1677_v37  ;;  %v3367_v56 = vpack.c.bf16 %v1680_v48, %v1679_v47  ;;  %v3441_v37 = vpack.c.bf16 %v1782_v32, %v1781_v31  ;;  %v1733_v6 = vld [vmem:[#allocation18 + $0x200] sm:$0xff]  ;;  %v1735_v47 = vld [vmem:[#allocation18 + $0x210] sm:$0xff] }
 0x8ce   :  { %2269 = vmatprep.mubr.f32.mxu1 %v433_v57  ;;  %2339 = vmatprep.mubr.f32.mxu0 %v504_v58  ;;  %v3397_v50 = vpack.c.bf16 %v1728_v44, %v1727_v43  ;;  %v3399_v57 = vpack.c.bf16 %v1712_v7, %v1711_v52  ;;  %v1681_v58 = vld [vmem:[#allocation18 + $0x60] sm:$0xff]  ;;  %v1752_v42 = vld [vmem:[#allocation18 + $0x298] sm:$0xff]  ;;  %v1783_v43 = vld [vmem:[#allocation18 + $0x390] sm:$0xff]  ;;  %v646_v54 = vadd.f32 %v4058_v12, %v351_v41 }
 0x8cf   :  { %3350 = vmatprep.subr.bf16.mxu1 %v3349_v51  ;;  %3382 = vmatprep.subr.bf16.mxu0 %v3381_v0  ;;  %v1697_v51 = vld [vmem:[#allocation18 + $0xe0] sm:$0xff]  ;;  %v1698_v0 = vld [vmem:[#allocation18 + $0xe8] sm:$0xff]  ;;  %v1736_v48 = vld [vmem:[#allocation18 + $0x218] sm:$0xff]  ;;  %v3413_v52 = vpack.c.bf16 %v1752_v42, %v1751_v4 }
 0x8d0   :  { %v1768_v7 = vld [vmem:[#allocation18 + $0x318] sm:$0xff]  ;;  %v1743_v41 = vld [vmem:[#allocation18 + $0x250] sm:$0xff] }
 0x8d1   :  { %3352 = vmatpush3.bf16.msra.mxu1 %v3351_v59  ;;  %3384 = vmatpush3.bf16.msra.mxu0 %v3383_v60  ;;  %v1682_v59 = vld [vmem:[#allocation18 + $0x68] sm:$0xff]  ;;  %v3369_v60 = vpack.c.bf16 %v1698_v0, %v1697_v51  ;;  %v1753_v51 = vld [vmem:[#allocation18 + $0x2a0] sm:$0xff]  ;;  %v1756_v12 = vld [vmem:[#allocation18 + $0x2b8] sm:$0xff] }
 0x8d2   :  { %3354 = vmatprep.subr.bf16.mxu1 %v3353_v15  ;;  %3386 = vmatprep.subr.bf16.mxu0 %v3385_v16  ;;  %v1714_v15 = vld [vmem:[#allocation18 + $0x168] sm:$0xff]  ;;  %v1699_v16 = vld [vmem:[#allocation18 + $0xf0] sm:$0xff]  ;;  %v3371_v2 = vpack.c.bf16 %v1682_v59, %v1681_v58  ;;  %v1737_v58 = vld [vmem:[#allocation18 + $0x220] sm:$0xff] }
 0x8d3   :  { %v3403_v20 = vpack.c.bf16 %v1714_v15, %v1713_v14  ;;  %v1754_v0 = vld [vmem:[#allocation18 + $0x2a8] sm:$0xff]  ;;  %v1769_v59 = vld [vmem:[#allocation18 + $0x320] sm:$0xff]  ;;  %v1755_v14 = vld [vmem:[#allocation18 + $0x2b0] sm:$0xff] }
 0x8d4   :  { %v1787_v15 = vld [vmem:[#allocation18 + $0x3b0] sm:$0xff]  ;;  %v3421_v19 = vpack.c.bf16 %v1756_v12, %v1755_v14  ;;  %v1744_v42 = vld [vmem:[#allocation18 + $0x258] sm:$0xff] }
 0x8d5   :  { %3356 = vmatpush3.bf16.msra.mxu1 %v3355_v21  ;;  %3388 = vmatpush3.bf16.msra.mxu0 %v3387_v22  ;;  %v1684_v21 = vld [vmem:[#allocation18 + $0x78] sm:$0xff]  ;;  %v3373_v22 = vpack.c.bf16 %v1700_v17, %v1699_v16 }
 0x8d6   :  { %3358 = vmatprep.subr.bf16.mxu1 %v3357_v28  ;;  %3390 = vmatprep.subr.bf16.mxu0 %v3389_v29  ;;  %v1716_v28 = vld [vmem:[#allocation18 + $0x178] sm:$0xff]  ;;  %v1749_v29 = vld [vmem:[#allocation18 + $0x280] sm:$0xff]  ;;  %v3375_v1 = vpack.c.bf16 %v1684_v21, %v1683_v3  ;;  %v1771_v3 = vld [vmem:[#allocation18 + $0x330] sm:$0xff] }
 0x8d7   :  { %v3407_v34 = vpack.c.bf16 %v1716_v28, %v1715_v27  ;;  %v1788_v16 = vld [vmem:[#allocation18 + $0x3b8] sm:$0xff]  ;;  %v1758_v27 = vld [vmem:[#allocation18 + $0x2c8] sm:$0xff]  ;;  %v1789_v28 = vld [vmem:[#allocation18 + $0x3c0] sm:$0xff] }
 0x8d8   :  { %v3453_v21 = vpack.c.bf16 %v1788_v16, %v1787_v15  ;;  %v1780_v14 = vld [vmem:[#allocation18 + $0x378] sm:$0xff]  ;;  %v347_v16 = vrot.slane %v4143_v53, %v346_v26 }
 0x8d9   :  { %3360 = vmatpush3.bf16.msra.mxu1 %v3359_v35  ;;  %3392 = vmatpush3.bf16.msra.mxu0 %v3391_v36  ;;  %v331_v35 = vrot.slane %v4143_v53, %v330_v13  ;;  %v3409_v36 = vpack.c.bf16 %v1750_v30, %v1749_v29  ;;  %v1784_v13 = vld [vmem:[#allocation18 + $0x398] sm:$0xff]  ;;  %v1790_v29 = vld [vmem:[#allocation18 + $0x3c8] sm:$0xff] }
 0x8da   :  { %3362 = vmatprep.subr.bf16.mxu1 %v3361_v38  ;;  %3394 = vmatprep.subr.bf16.mxu0 %v3393_v39  ;;  %v1734_v38 = vld [vmem:[#allocation18 + $0x208] sm:$0xff]  ;;  %v343_v39 = vrot.slane %v4143_v53, %v342_v24  ;;  %v3443_v24 = vpack.c.bf16 %v1766_v8, %v1765_v40  ;;  %v3445_v25 = vpack.c.bf16 %v1784_v13, %v1783_v43  ;;  %v1775_v43 = vld [vmem:[#allocation18 + $0x350] sm:$0xff] }
 0x8db   :  { %v3411_v44 = vpack.c.bf16 %v1734_v38, %v1733_v6  ;;  %v1760_v6 = vld [vmem:[#allocation18 + $0x2d8] sm:$0xff]  ;;  %v1791_v38 = vld [vmem:[#allocation18 + $0x3d0] sm:$0xff] }
 0x8dd   :  { %3364 = vmatpush3.bf16.msra.mxu1 %v3363_v45  ;;  %3396 = vmatpush3.bf16.msra.mxu0 %v3395_v46  ;;  %v431_v45 = vadd.f32 %v4039_v62, %v323_v33  ;;  %v502_v46 = vadd.f32 %v4041_v63, %v331_v35  ;;  %v1785_v62 = vld [vmem:[#allocation18 + $0x3a0] sm:$0xff]  ;;  %v3415_v63 = vpack.c.bf16 %v1736_v48, %v1735_v47  ;;  %v1794_v47 = vld [vmem:[#allocation18 + $0x3e8] sm:$0xff] }
 0x8de   :  { %3366 = vmatprep.subr.bf16.mxu1 %v3365_v49  ;;  %3398 = vmatprep.subr.bf16.mxu0 %v3397_v50  ;;  %v1767_v49 = vld [vmem:[#allocation18 + $0x310] sm:$0xff]  ;;  %v575_v50 = vadd.f32 %v4056_v11, %v343_v39  ;;  %v1738_v11 = vld [vmem:[#allocation18 + $0x228] sm:$0xff]  ;;  %v1741_v33 = vld [vmem:[#allocation18 + $0x240] sm:$0xff]  ;;  %v3457_v35 = vpack.c.bf16 %v1790_v29, %v1789_v28  ;;  %v3431_v48 = vpack.c.bf16 %v1744_v42, %v1743_v41 }
 0x8df   :  { %v3419_v17 = vpack.c.bf16 %v1738_v11, %v1737_v58  ;;  %v1792_v39 = vld [vmem:[#allocation18 + $0x3d8] sm:$0xff]  ;;  %v1747_v11 = vld [vmem:[#allocation18 + $0x270] sm:$0xff] }
 0x8e0   :  { %v3461_v13 = vpack.c.bf16 %v1792_v39, %v1791_v38 }
 0x8e1   :  { %3368 = vmatpush3.bf16.msra.mxu1 %v3367_v56  ;;  %3400 = vmatpush3.bf16.msra.mxu0 %v3399_v57  ;;  %v3447_v56 = vpack.c.bf16 %v1768_v7, %v1767_v49  ;;  %v3417_v57 = vpack.c.bf16 %v1754_v0, %v1753_v51  ;;  %v1777_v7 = vld [vmem:[#allocation18 + $0x360] sm:$0xff]  ;;  %v1778_v0 = vld [vmem:[#allocation18 + $0x368] sm:$0xff] }
 0x8e2   :  { %3370 = vmatprep.subr.bf16.mxu1 %v3369_v60  ;;  %3402 = vmatprep.subr.bf16.mxu0 %v3401_v61  ;;  %v3449_v60 = vpack.c.bf16 %v1786_v55, %v1785_v62  ;;  %v1770_v61 = vld [vmem:[#allocation18 + $0x328] sm:$0xff]  ;;  %v1764_v62 = vld [vmem:[#allocation18 + $0x2f8] sm:$0xff]  ;;  %v1795_v55 = vld [vmem:[#allocation18 + $0x3f0] sm:$0xff] }
 0x8e3   :  { %v3451_v18 = vpack.c.bf16 %v1770_v61, %v1769_v59  ;;  %v1748_v59 = vld [vmem:[#allocation18 + $0x278] sm:$0xff]  ;;  %v1779_v61 = vld [vmem:[#allocation18 + $0x370] sm:$0xff] }
 0x8e4   :  { %v3439_v12 = vpack.c.bf16 %v1748_v59, %v1747_v11  ;;  %v3471_v15 = vpack.c.bf16 %v1780_v14, %v1779_v61 }
 0x8e5   :  { %3372 = vmatpush3.bf16.msra.mxu1 %v3371_v2  ;;  %3404 = vmatpush3.bf16.msra.mxu0 %v3403_v20  ;;  %v1739_v2 = vld [vmem:[#allocation18 + $0x230] sm:$0xff]  ;;  %v1740_v20 = vld [vmem:[#allocation18 + $0x238] sm:$0xff] }
 0x8e6   :  { %3374 = vmatprep.subr.bf16.mxu1 %v3373_v22  ;;  %3406 = vmatprep.subr.bf16.mxu0 %v3405_v23  ;;  %v1772_v22 = vld [vmem:[#allocation18 + $0x338] sm:$0xff]  ;;  %v1757_v23 = vld [vmem:[#allocation18 + $0x2c0] sm:$0xff]  ;;  %v3423_v30 = vpack.c.bf16 %v1740_v20, %v1739_v2 }
 0x8e7   :  { %v3455_v31 = vpack.c.bf16 %v1772_v22, %v1771_v3  ;;  %v3425_v32 = vpack.c.bf16 %v1758_v27, %v1757_v23 }
 0x8e9   :  { %3376 = vmatpush3.bf16.msra.mxu1 %v3375_v1  ;;  %3408 = vmatpush3.bf16.msra.mxu0 %v3407_v34  ;;  %v1742_v1 = vld [vmem:[#allocation18 + $0x248] sm:$0xff]  ;;  %v1773_v34 = vld [vmem:[#allocation18 + $0x340] sm:$0xff] }
 0x8ea   :  { %3410 = vmatprep.subr.bf16.mxu1 %v3409_v36  ;;  %3442 = vmatprep.subr.bf16.mxu0 %v3441_v37  ;;  %v1774_v36 = vld [vmem:[#allocation18 + $0x348] sm:$0xff]  ;;  %v1759_v37 = vld [vmem:[#allocation18 + $0x2d0] sm:$0xff]  ;;  %v3427_v40 = vpack.c.bf16 %v1742_v1, %v1741_v33 }
 0x8eb   :  { %v3459_v8 = vpack.c.bf16 %v1774_v36, %v1773_v34  ;;  %v3429_v4 = vpack.c.bf16 %v1760_v6, %v1759_v37 }
 0x8ec   :  { %2270 = vmatmul.mubr.f32.vlgmr.msra.gmra.mrb[16].mxu1 %v431_v45  ;;  %2340 = vmatmul.mubr.f32.vlgmr.msra.gmra.mrb[16].mxu0 %v502_v46  ;;  %v1761_v45 = vld [vmem:[#allocation18 + $0x2e0] sm:$0xff]  ;;  %v1762_v46 = vld [vmem:[#allocation18 + $0x2e8] sm:$0xff] }
 0x8ed   :  { %3412 = vmatpush3.bf16.msra.mxu1 %v3411_v44  ;;  %2409 = vmatprep.mubr.f32.mxu1 %v575_v50  ;;  %v1776_v44 = vld [vmem:[#allocation18 + $0x358] sm:$0xff]  ;;  %v3433_v50 = vpack.c.bf16 %v1762_v46, %v1761_v45 }
 0x8ee   :  { %3444 = vmatpush3.bf16.msra.mxu0 %v3443_v24  ;;  %2479 = vmatprep.mubr.f32.mxu0 %v646_v54  ;;  %v1793_v24 = vld [vmem:[#allocation18 + $0x3e0] sm:$0xff]  ;;  %v3463_v49 = vpack.c.bf16 %v1776_v44, %v1775_v43  ;;  %v1763_v54 = vld [vmem:[#allocation18 + $0x2f0] sm:$0xff] }
 0x8ef   :  { %3414 = vmatprep.subr.bf16.mxu1 %v3413_v52  ;;  %3446 = vmatprep.subr.bf16.mxu0 %v3445_v25  ;;  %v1745_v52 = vld [vmem:[#allocation18 + $0x260] sm:$0xff]  ;;  %v1746_v25 = vld [vmem:[#allocation18 + $0x268] sm:$0xff]  ;;  %v3465_v51 = vpack.c.bf16 %v1794_v47, %v1793_v24  ;;  %v3437_v58 = vpack.c.bf16 %v1764_v62, %v1763_v54 }
 0x8f1   :  { %3416 = vmatpush3.bf16.msra.mxu1 %v3415_v63  ;;  %v1796_v63 = vld [vmem:[#allocation18 + $0x3f8] sm:$0xff] }
 0x8f2   :  { %3448 = vmatpush3.bf16.msra.mxu0 %v3447_v56  ;;  %3418 = vmatprep.subr.bf16.mxu1 %v3417_v57  ;;  %v3435_v56 = vpack.c.bf16 %v1746_v25, %v1745_v52  ;;  %v3467_v57 = vpack.c.bf16 %v1778_v0, %v1777_v7 }
 0x8f3   :  { %3450 = vmatprep.subr.bf16.mxu0 %v3449_v60  ;;  %v3469_v60 = vpack.c.bf16 %v1796_v63, %v1795_v55 }
 0x8f5   :  { %3420 = vmatpush3.bf16.msra.mxu1 %v3419_v17  ;;  %v644_v17 = vadd.f32 %v4052_v9, %v347_v16 }
 0x8f6   :  { %3452 = vmatpush3.bf16.msra.mxu0 %v3451_v18  ;;  %3422 = vmatprep.subr.bf16.mxu1 %v3421_v19 }
 0x8f7   :  { %3454 = vmatprep.subr.bf16.mxu0 %v3453_v21 }
 0x8f9   :  { %3424 = vmatpush3.bf16.msra.mxu1 %v3423_v30 }
 0x8fa   :  { %3456 = vmatpush3.bf16.msra.mxu0 %v3455_v31  ;;  %3426 = vmatprep.subr.bf16.mxu1 %v3425_v32 }
 0x8fb   :  { %3458 = vmatprep.subr.bf16.mxu0 %v3457_v35 }
 0x8fd   :  { %3428 = vmatpush3.bf16.msra.mxu1 %v3427_v40 }
 0x8fe   :  { %3460 = vmatpush3.bf16.msra.mxu0 %v3459_v8  ;;  %3430 = vmatprep.subr.bf16.mxu1 %v3429_v4  ;;  %v2526_v4 = vld [vmem:[%s4202_s13] ss:$0 sm:$0xff] }
 0x8ff   :  { %3462 = vmatprep.subr.bf16.mxu0 %v3461_v13 }
 0x901   :  { %3432 = vmatpush3.bf16.msra.mxu1 %v3431_v48 }
 0x902   :  { %3464 = vmatpush3.bf16.msra.mxu0 %v3463_v49  ;;  %3434 = vmatprep.subr.bf16.mxu1 %v3433_v50 }
 0x903   :  { %3466 = vmatprep.subr.bf16.mxu0 %v3465_v51 }
 0x905   :  { %3436 = vmatpush3.bf16.msra.mxu1 %v3435_v56 }
 0x906   :  { %3468 = vmatpush3.bf16.msra.mxu0 %v3467_v57  ;;  %3438 = vmatprep.subr.bf16.mxu1 %v3437_v58 }
 0x907   :  { %3470 = vmatprep.subr.bf16.mxu0 %v3469_v60 }
 0x909   :  { %3440 = vmatpush3.bf16.msra.mxu1 %v3439_v12 }
 0x90a   :  { %3472 = vmatpush3.bf16.msra.mxu0 %v3471_v15 }
 0x90c   :  { %2410 = vmatmul.mubr.f32.vlgmr.msra.gmra.mrb[18].mxu1 %v4054_v10 }
 0x90d   :  { %2480 = vmatmul.mubr.f32.vlgmr.msra.gmra.mrb[18].mxu0 %v644_v17 }
 0x95f   :  { %v2580_v18 = vpop.f32.mrb[12].mxu1  ;;  %v2615_v19 = vpop.f32.mrb[12].mxu0 }
 0x960   :  { %v2581_v2 = vpop.f32.mrb[13].mxu1  ;;  %v2616_v20 = vpop.f32.mrb[13].mxu0 }
 0x961   :  { %v2582_v3 = vadd.f32 %v2581_v2, %v2580_v18  ;;  %v2617_v21 = vadd.f32 %v2616_v20, %v2615_v19 }
 0x963   :  { %v2062_v22 = vadd.f32 %v2617_v21, %v2582_v3 }
 0x99f   :  { %v2650_v23 = vpop.f32.mrb[14].mxu1  ;;  %v2685_v27 = vpop.f32.mrb[14].mxu0 }
 0x9a0   :  { %v2651_v5 = vpop.f32.mrb[15].mxu1  ;;  %v2686_v28 = vpop.f32.mrb[15].mxu0 }
 0x9a1   :  { %v2652_v26 = vadd.f32 %v2651_v5, %v2650_v23  ;;  %v2687_v53 = vadd.f32 %v2686_v28, %v2685_v27 }
 0x9a3   :  { %v2132_v29 = vadd.f32 %v2652_v26, %v2062_v22 }
 0x9a5   :  { %v2202_v30 = vadd.f32 %v2687_v53, %v2132_v29 }
 0x9bf   :  { %v2720_v31 = vpop.f32.mrb[16].mxu1  ;;  %v2755_v9 = vpop.f32.mrb[16].mxu0 }
 0x9c0   :  { %v2721_v32 = vpop.f32.mrb[17].mxu1  ;;  %v2756_v10 = vpop.f32.mrb[17].mxu0 }
 0x9c1   :  { %v2722_v33 = vadd.f32 %v2721_v32, %v2720_v31  ;;  %v2757_v1 = vadd.f32 %v2756_v10, %v2755_v9 }
 0x9c3   :  { %v2272_v34 = vadd.f32 %v2722_v33, %v2202_v30 }
 0x9c5   :  { %v2342_v35 = vadd.f32 %v2757_v1, %v2272_v34 }
 0x9df   :  { %v2790_v36 = vpop.f32.mrb[18].mxu1 }
 0x9e0   :  { %v2825_v37 = vpop.f32.mrb[18].mxu0  ;;  %v2791_v6 = vpop.f32.mrb[19].mxu1 }
 0x9e1   :  { %v2792_v38 = vadd.f32 %v2791_v6, %v2790_v36  ;;  %v2826_v39 = vpop.f32.mrb[19].mxu0 }
 0x9e2   :  { %v2827_v40 = vadd.f32 %v2826_v39, %v2825_v37 }
 0x9e3   :  { %v2412_v8 = vadd.f32 %v2792_v38, %v2342_v35 }
 0x9e5   :  { %v2482_v41 = vadd.f32 %v2827_v40, %v2412_v8 }
 0x9e7   :  { %v2492_v42 = vadd.f32 %v2526_v4, %v2482_v41 }
 0x9e9   :  { %2493 = vst [vmem:[#allocation21] sm:$0x3] %v2492_v42 }
 0x9ea   :  { %3735 = shalt.err (!%p3732_p6)
}
 0x9eb   :  { %s3736_s21 = scalar_lea.hbm %s4203_s14, 32 }
 0x9ec   :  { %p3737_p7 = scmp.ne.s32.totalorder %s4203_s14, %s3736_s21  ;;  %p3740_p8 = scmp.lt.u32.totalorder %s3736_s21, %s4203_s14 }
 0x9ee   :  { %p3742_p9 = pnand %p3740_p8, %p3737_p7 }
 0x9f0   :  { %3745 = shalt.err (!%p3742_p9)
}
 0x9f1   :  { %2503 = dma.vmem_to_hbm [thread:$0]  %s2501_s5, 32, %s4203_s14, [#allocation8]  }
 0x9f2   :  { %3756 = dma.done.wait [#allocation8], 32  }
 0x9f3   :  { %3757 = vsyncadd [#allocation8], 4294967264 }
 0x9f4   :  { %2507 = vsyncpa [#allocation7], 1 }
 0x9f5   :  { %2508 = vsyncpa [#allocation10], 1 }
 0x9f6   :  { %2509 = vsyncpa [#allocation13], 1 }
 0x9f7   :  { %2510 = vsyncpa [#allocation16], 1 }
 0x9f8   :  { %2511 = vsyncpa [#allocation19], 1 }
 0x9f9   :  { %2512 = vsyncpa [#allocation8], 1 }

</bundles_post_ra>
